<compile_context>
chip_gen: v6e
topology: v6e:2x2x1
jax: 0.10.0
libtpu: 0.0.40
codegen_flags: <defaults>
</compile_context>

<pallas_src>
import jax
import jax.numpy as jnp
from jax.experimental import pallas as pl
from jax.experimental.pallas import tpu as pltpu

NUM_GROUPS = 8
NUM_HEADS = 4
EPS = 1e-5


def _self_attention_kernel(x_ref, w_ref, b_ref, g_ref, o_ref):
    C, N = x_ref.shape                     # one sample per grid step, channel-major
    hd = C // NUM_HEADS
    C3 = 3 * C

    x_cm = x_ref[...]                      # (C, N) f32 as stored in HBM (no host transpose)
    x_rm = x_cm.T                          # (N, C) on-chip XLU transpose

    # ---- GroupNorm(8, C) stats (affine folded into the fused qkv weights) ----
    # Per-channel sums (sublane reduce) -> group mean / E[x^2] broadcast back per channel
    # via ONE precomputed block-diagonal averaging matrix (entries 1/(N*group_size)).
    col_sum = jnp.sum(x_rm, axis=0, keepdims=True)            # (1, C)
    col_sq = jnp.sum(x_rm * x_rm, axis=0, keepdims=True)      # (1, C)
    g = g_ref[...]                                             # (C, C) f32 constant
    mean = jnp.dot(col_sum, g, preferred_element_type=jnp.float32)   # (1, C)
    ex2 = jnp.dot(col_sq, g, preferred_element_type=jnp.float32)     # (1, C)
    var = jnp.maximum(ex2 - mean * mean, 0.0)
    xn = (x_rm - mean) * jax.lax.rsqrt(var + EPS)              # (N, C) f32

    # ---- fused projection: GroupNorm affine + qkv conv + MHA in-proj + q-scale ----
    w = w_ref[...]                         # (C, 4C) bf16, pre-transposed & pre-fused on host
    bias = b_ref[...]                      # (1, 4C) f32
    qkv = (jnp.dot(xn.astype(jnp.bfloat16), w[:, :C3],
                   preferred_element_type=jnp.float32)
           + bias[:, :C3]).astype(jnp.bfloat16)                # (N, 3C) single bf16 copy

    # ---- attention: per-head scores/PV, heads concatenated, ONE fused out-projection ----
    heads = []
    for h in range(NUM_HEADS):             # tiny static trip count (4)
        base = 3 * hd * h                  # columns grouped per head: [q_h | k_h | v_h]
        qh = qkv[:, base:base + hd]        # softmax scale pre-folded into W_q
        kh = qkv[:, base + hd:base + 2 * hd]
        vh = qkv[:, base + 2 * hd:base + 3 * hd]
        s = jax.lax.dot_general(qh, kh, (((1,), (1,)), ((), ())),
                                preferred_element_type=jnp.float32)   # (N, N)
        s = s - jnp.max(s, axis=-1, keepdims=True)
        p = jnp.exp(s)
        p = p * pl.reciprocal(jnp.sum(p, axis=-1, keepdims=True), approx=True)
        heads.append(jnp.dot(p.astype(jnp.bfloat16), vh,
                             preferred_element_type=jnp.float32))      # (N, hd)

    attn = jnp.concatenate(heads, axis=1).astype(jnp.bfloat16)         # (N, C)
    out_rm = jnp.dot(attn, w[:, C3:], preferred_element_type=jnp.float32) + bias[:, C3:]

    # residual on the pre-norm input; store channel-major (lane dim = N)
    o_ref[...] = (x_rm + out_rm).T


def _fuse_params(params):
    """Fold GroupNorm affine, qkv 1x1 conv, MHA in/out projections, out 1x1 conv and
    the 1/sqrt(hd) softmax scale into one (C, 4C) bf16 pre-transposed weight slab
    (qkv columns grouped per head) and one (1, 4C) f32 bias row."""
    gamma, beta, w_qkv, b_qkv, w_in, b_in, w_op, b_op, w_co, b_co = params
    C = gamma.shape[0]
    hd = C // NUM_HEADS
    scale = 1.0 / float(hd) ** 0.5

    full_w, full_b = [], []                       # channel-major fused q/k/v linears
    for i, s in enumerate((scale, 1.0, 1.0)):     # q (scaled), k, v
        Wc = w_qkv[i * C:(i + 1) * C]             # qkv conv slice      (C, C)
        bc = b_qkv[i * C:(i + 1) * C]
        Wi = w_in[i * C:(i + 1) * C]              # mha in_proj slice   (C, C)
        bi = b_in[i * C:(i + 1) * C]
        A = Wi @ Wc                               # fused linear        (C, C)
        c = Wi @ bc + bi
        full_w.append((A * gamma[None, :]) * s)   # fold GroupNorm gamma + q-scale
        full_b.append((A @ beta + c) * s)         # fold GroupNorm beta + q-scale

    # Pack columns grouped per head: [q_h | k_h | v_h] blocks (contiguous per-head reads).
    w_cols, b_cols = [], []
    for h in range(NUM_HEADS):
        sl = slice(h * hd, (h + 1) * hd)
        for i in range(3):
            w_cols.append(full_w[i][sl].T)        # (C, hd), pre-transposed for xn @ W
            b_cols.append(full_b[i][sl])

    W_out = w_co @ w_op                           # fused out_proj + out conv (C, C)
    b_out = w_co @ b_op + b_co
    w_cols.append(W_out.T)
    b_cols.append(b_out)

    w_pack = jnp.concatenate(w_cols, axis=1).astype(jnp.bfloat16)            # (C, 4C) bf16
    b_pack = jnp.concatenate(b_cols).reshape(1, 4 * C).astype(jnp.float32)   # (1, 4C) f32
    return w_pack, b_pack


def _group_avg_matrix(C, N):
    """Block-diagonal (C, C) matrix averaging per-channel sums within each GroupNorm
    group and broadcasting the result back per channel (1/(N*group_size) entries)."""
    gs = C // NUM_GROUPS
    idx = jnp.arange(C)
    same = (idx[:, None] // gs) == (idx[None, :] // gs)
    return same.astype(jnp.float32) / float(N * gs)


def _vmem_limit_bytes(C, N):
    f32, bf16 = 4, 2
    io = 2 * 2 * C * N * f32                                  # x + out blocks, double-buffered
    const = 2 * (C * 4 * C * bf16) + 4 * C * f32 + C * C * f32
    tmp = (4 * N * C * f32                                    # x_rm / xn / out_rm / residual
           + N * 3 * C * (f32 + bf16)                         # qkv accumulate + bf16 copy
           + NUM_HEADS * 2 * N * N * f32                      # unrolled head score/prob tiles
           + N * C * f32)                                     # concatenated head outputs
    est = io + const + tmp
    return int(min(max(2 * est, 32 * 1024 * 1024), 64 * 1024 * 1024))


def self_attention_forward(x, params):
    """x: (B, C, H, W) float32 -> (B, C, H, W) float32 (PyTorch NCHW convention)."""
    B, C, H, W = x.shape
    N = H * W
    hd = C // NUM_HEADS

    w_pack, b_pack = _fuse_params(params)
    gavg = _group_avg_matrix(C, N)
    x_cm = x.reshape(B, C, N)                 # pure reshape: stays channel-major, no transpose

    flops = B * (2 * N * C * 3 * C            # fused qkv projection
                 + 2 * N * C * C              # fused out projection
                 + NUM_HEADS * 2 * 2 * N * N * hd   # scores + PV
                 + 2 * 2 * C * C)             # GroupNorm stat matmuls
    transcendentals = B * NUM_HEADS * N * N
    bytes_accessed = (2 * x.size * 4 + w_pack.size * 2 + b_pack.size * 4 + gavg.size * 4)

    out_cm = pl.pallas_call(
        _self_attention_kernel,
        out_shape=jax.ShapeDtypeStruct((B, C, N), jnp.float32),
        grid=(B,),                            # one sample per step; parallel across TCs
        in_specs=[
            pl.BlockSpec((None, C, N), lambda b: (b, 0, 0)),   # x sample (channel-major)
            pl.BlockSpec((C, 4 * C), lambda b: (0, 0)),        # packed fused weights (bf16)
            pl.BlockSpec((1, 4 * C), lambda b: (0, 0)),        # packed fused biases  (f32)
            pl.BlockSpec((C, C), lambda b: (0, 0)),            # group-averaging matrix
        ],
        out_specs=pl.BlockSpec((None, C, N), lambda b: (b, 0, 0)),
        compiler_params=pltpu.CompilerParams(
            dimension_semantics=("parallel",),
            vmem_limit_bytes=_vmem_limit_bytes(C, N)),
        cost_estimate=pl.CostEstimate(flops=int(flops),
                                      transcendentals=int(transcendentals),
                                      bytes_accessed=int(bytes_accessed)),
    )(x_cm, w_pack, b_pack, gavg)

    return out_cm.reshape(B, C, H, W)


def _reference(x, params):
    """Pure-JAX f32 replica of the PyTorch forward (unfused) for a sanity check."""
    gamma, beta, w_qkv, b_qkv, w_in, b_in, w_op, b_op, w_co, b_co = params
    B, C, H, W = x.shape
    N = H * W
    hd = C // NUM_HEADS

    xg = x.reshape(B, NUM_GROUPS, C // NUM_GROUPS, H, W)
    mean = xg.mean(axis=(2, 3, 4), keepdims=True)
    var = ((xg - mean) ** 2).mean(axis=(2, 3, 4), keepdims=True)
    xn = ((xg - mean) / jnp.sqrt(var + EPS)).reshape(B, C, H, W)
    xn = xn * gamma[None, :, None, None] + beta[None, :, None, None]

    xs = jnp.transpose(xn.reshape(B, C, N), (0, 2, 1))         # (B, N, C)
    qkv = xs @ w_qkv.T + b_qkv
    q, k, v = qkv[..., :C], qkv[..., C:2 * C], qkv[..., 2 * C:]
    qp = q @ w_in[:C].T + b_in[:C]
    kp = k @ w_in[C:2 * C].T + b_in[C:2 * C]
    vp = v @ w_in[2 * C:].T + b_in[2 * C:]
    qp = qp.reshape(B, N, NUM_HEADS, hd).transpose(0, 2, 1, 3)
    kp = kp.reshape(B, N, NUM_HEADS, hd).transpose(0, 2, 1, 3)
    vp = vp.reshape(B, N, NUM_HEADS, hd).transpose(0, 2, 1, 3)
    s = jnp.einsum("bhnd,bhmd->bhnm", qp, kp) / jnp.sqrt(float(hd))
    p = jax.nn.softmax(s, axis=-1)
    a = jnp.einsum("bhnm,bhmd->bhnd", p, vp).transpose(0, 2, 1, 3).reshape(B, N, C)
    a = a @ w_op.T + b_op
    out = a @ w_co.T + b_co
    out = jnp.transpose(out, (0, 2, 1)).reshape(B, C, H, W)
    return x + out


if __name__ == "__main__":
    B, C, H, W = 4, 32, 8, 8   # C divisible by 8 (groups) and 4 (heads); N = 64
    key = jax.random.PRNGKey(0)
    ks = jax.random.split(key, 11)

    x = jax.random.normal(ks[0], (B, C, H, W), jnp.float32)

    # Deterministic synthetic parameters (shapes match the PyTorch module).
    gamma = 1.0 + 0.1 * jax.random.normal(ks[1], (C,), jnp.float32)   # GroupNorm.weight
    beta = 0.1 * jax.random.normal(ks[2], (C,), jnp.float32)          # GroupNorm.bias
    w_qkv = 0.1 * jax.random.normal(ks[3], (3 * C, C), jnp.float32)   # qkv Conv2d weight (3C,C,1,1)
    b_qkv = 0.05 * jax.random.normal(ks[4], (3 * C,), jnp.float32)
    w_in = 0.1 * jax.random.normal(ks[5], (3 * C, C), jnp.float32)    # mha in_proj_weight
    b_in = 0.05 * jax.random.normal(ks[6], (3 * C,), jnp.float32)     # mha in_proj_bias
    w_op = 0.1 * jax.random.normal(ks[7], (C, C), jnp.float32)        # mha out_proj.weight
    b_op = 0.05 * jax.random.normal(ks[8], (C,), jnp.float32)
    w_co = 0.1 * jax.random.normal(ks[9], (C, C), jnp.float32)        # out Conv2d weight (C,C,1,1)
    b_co = 0.05 * jax.random.normal(ks[10], (C,), jnp.float32)

    params = (gamma, beta, w_qkv, b_qkv, w_in, b_in, w_op, b_op, w_co, b_co)

    fwd = jax.jit(self_attention_forward)
    out = jax.block_until_ready(fwd(x, params))
    ref = jax.block_until_ready(_reference(x, params))

    assert out.shape == (B, C, H, W)
    max_err = float(jnp.max(jnp.abs(out - ref)))
    # bf16 MXU operands with f32 accumulation; approx softmax reciprocal.
    assert max_err < 3e-3, f"mismatch vs reference, max abs err = {max_err}"
    print("KERNEL_OK")
</pallas_src>

<mosaic_0001>
module attributes {stable_mosaic.version = 11 : i64} {
  func.func @_self_attention_kernel(%arg0: i32, %arg1: memref<1x32x64xf32, #tpu.memory_space<vmem>>, %arg2: memref<32x128xbf16, #tpu.memory_space<vmem>>, %arg3: memref<1x128xf32, #tpu.memory_space<vmem>>, %arg4: memref<32x32xf32, #tpu.memory_space<vmem>>, %arg5: memref<1x32x64xf32, #tpu.memory_space<vmem>>) attributes {dimension_semantics = [#tpu.dimension_semantics<parallel>], iteration_bounds = array<i64: 4>, scalar_prefetch = 0 : i64, scratch_operands = 0 : i64, tpu.core_type = #tpu.core_type<tc>, window_params = [{transform_indices = @transform_0, window_bounds = array<i64: 1, 32, 64>}, {pipeline_mode = #tpu.pipeline_mode<synchronous>, transform_indices = @transform_1, window_bounds = array<i64: 32, 128>}, {pipeline_mode = #tpu.pipeline_mode<synchronous>, transform_indices = @transform_2, window_bounds = array<i64: 1, 128>}, {pipeline_mode = #tpu.pipeline_mode<synchronous>, transform_indices = @transform_3, window_bounds = array<i64: 32, 32>}, {transform_indices = @transform_4, window_bounds = array<i64: 1, 32, 64>}]} {
    %c0 = arith.constant 0 : index
    %c0_0 = arith.constant 0 : index
    %c0_1 = arith.constant 0 : index
    %0 = vector.load %arg1[%c0, %c0_0, %c0_1] : memref<1x32x64xf32, #tpu.memory_space<vmem>>, vector<1x32x64xf32>
    %1 = vector.shape_cast %0 : vector<1x32x64xf32> to vector<32x64xf32>
    %2 = tpu.transpose %1, [1, 0] : vector<32x64xf32> -> vector<64x32xf32>
    %cst = arith.constant dense<0.000000e+00> : vector<32xf32>
    %3 = vector.multi_reduction <add>, %2, %cst [0] : vector<64x32xf32> to vector<32xf32>
    %4 = vector.shape_cast %3 : vector<32xf32> to vector<1x32xf32>
    %5 = arith.mulf %2, %2 : vector<64x32xf32>
    %cst_2 = arith.constant dense<0.000000e+00> : vector<32xf32>
    %6 = vector.multi_reduction <add>, %5, %cst_2 [0] : vector<64x32xf32> to vector<32xf32>
    %7 = vector.shape_cast %6 : vector<32xf32> to vector<1x32xf32>
    %c0_3 = arith.constant 0 : index
    %c0_4 = arith.constant 0 : index
    %8 = vector.load %arg4[%c0_3, %c0_4] : memref<32x32xf32, #tpu.memory_space<vmem>>, vector<32x32xf32>
    %cst_5 = arith.constant dense<0.000000e+00> : vector<1x32xf32>
    %9 = tpu.matmul %4, %8, %cst_5 {dimension_numbers = #tpu.dot_dimension_numbers<[1], [0], [0], [1], [0, 0, 1, 1], [], []>} : vector<1x32xf32>, vector<32x32xf32>, vector<1x32xf32> -> vector<1x32xf32>
    %cst_6 = arith.constant dense<0.000000e+00> : vector<1x32xf32>
    %10 = tpu.matmul %7, %8, %cst_6 {dimension_numbers = #tpu.dot_dimension_numbers<[1], [0], [0], [1], [0, 0, 1, 1], [], []>} : vector<1x32xf32>, vector<32x32xf32>, vector<1x32xf32> -> vector<1x32xf32>
    %11 = arith.mulf %9, %9 : vector<1x32xf32>
    %12 = arith.subf %10, %11 : vector<1x32xf32>
    %cst_7 = arith.constant 0.000000e+00 : f32
    %13 = vector.broadcast %cst_7 : f32 to vector<1x32xf32>
    %14 = arith.maximumf %12, %13 : vector<1x32xf32>
    %15 = vector.broadcast %9 : vector<1x32xf32> to vector<64x32xf32>
    %16 = arith.subf %2, %15 : vector<64x32xf32>
    %cst_8 = arith.constant 9.99999974E-6 : f32
    %17 = vector.broadcast %cst_8 : f32 to vector<1x32xf32>
    %18 = arith.addf %14, %17 : vector<1x32xf32>
    %19 = math.rsqrt %18 : vector<1x32xf32>
    %20 = vector.broadcast %19 : vector<1x32xf32> to vector<64x32xf32>
    %21 = arith.mulf %16, %20 : vector<64x32xf32>
    %c0_9 = arith.constant 0 : index
    %c0_10 = arith.constant 0 : index
    %22 = vector.load %arg2[%c0_9, %c0_10] : memref<32x128xbf16, #tpu.memory_space<vmem>>, vector<32x128xbf16>
    %c0_11 = arith.constant 0 : index
    %c0_12 = arith.constant 0 : index
    %23 = vector.load %arg3[%c0_11, %c0_12] : memref<1x128xf32, #tpu.memory_space<vmem>>, vector<1x128xf32>
    %24 = arith.truncf %21 : vector<64x32xf32> to vector<64x32xbf16>
    %25 = vector.extract_strided_slice %22 {offsets = [0, 0], sizes = [32, 96], strides = [1, 1]} : vector<32x128xbf16> to vector<32x96xbf16>
    %cst_13 = arith.constant dense<0.000000e+00> : vector<64x96xf32>
    %26 = tpu.matmul %24, %25, %cst_13 {dimension_numbers = #tpu.dot_dimension_numbers<[1], [0], [0], [1], [0, 0, 1, 1], [], []>} : vector<64x32xbf16>, vector<32x96xbf16>, vector<64x96xf32> -> vector<64x96xf32>
    %27 = vector.extract_strided_slice %23 {offsets = [0, 0], sizes = [1, 96], strides = [1, 1]} : vector<1x128xf32> to vector<1x96xf32>
    %28 = vector.broadcast %27 : vector<1x96xf32> to vector<64x96xf32>
    %29 = arith.addf %26, %28 : vector<64x96xf32>
    %30 = arith.truncf %29 : vector<64x96xf32> to vector<64x96xbf16>
    %31 = vector.extract_strided_slice %30 {offsets = [0, 0], sizes = [64, 8], strides = [1, 1]} : vector<64x96xbf16> to vector<64x8xbf16>
    %32 = vector.extract_strided_slice %30 {offsets = [0, 8], sizes = [64, 8], strides = [1, 1]} : vector<64x96xbf16> to vector<64x8xbf16>
    %33 = vector.extract_strided_slice %30 {offsets = [0, 16], sizes = [64, 8], strides = [1, 1]} : vector<64x96xbf16> to vector<64x8xbf16>
    %cst_14 = arith.constant dense<0.000000e+00> : vector<64x64xf32>
    %34 = tpu.matmul %31, %32, %cst_14 {dimension_numbers = #tpu.dot_dimension_numbers<[1], [1], [0], [0], [0, 0, 1, 0], [], []>} : vector<64x8xbf16>, vector<64x8xbf16>, vector<64x64xf32> -> vector<64x64xf32>
    %cst_15 = arith.constant dense<0xFF800000> : vector<64xf32>
    %35 = vector.multi_reduction <maximumf>, %34, %cst_15 [1] : vector<64x64xf32> to vector<64xf32>
    %36 = vector.shape_cast %35 : vector<64xf32> to vector<64x1xf32>
    %37 = vector.broadcast %36 : vector<64x1xf32> to vector<64x64xf32>
    %38 = arith.subf %34, %37 : vector<64x64xf32>
    %39 = math.exp %38 : vector<64x64xf32>
    %cst_16 = arith.constant dense<0.000000e+00> : vector<64xf32>
    %40 = vector.multi_reduction <add>, %39, %cst_16 [1] : vector<64x64xf32> to vector<64xf32>
    %41 = vector.shape_cast %40 : vector<64xf32> to vector<64x1xf32>
    %42 = tpu.reciprocal %41 {approx = true} : vector<64x1xf32> -> vector<64x1xf32>
    %43 = vector.broadcast %42 : vector<64x1xf32> to vector<64x64xf32>
    %44 = arith.mulf %39, %43 : vector<64x64xf32>
    %45 = arith.truncf %44 : vector<64x64xf32> to vector<64x64xbf16>
    %cst_17 = arith.constant dense<0.000000e+00> : vector<64x8xf32>
    %46 = tpu.matmul %45, %33, %cst_17 {dimension_numbers = #tpu.dot_dimension_numbers<[1], [0], [0], [1], [0, 0, 1, 1], [], []>} : vector<64x64xbf16>, vector<64x8xbf16>, vector<64x8xf32> -> vector<64x8xf32>
    %47 = vector.extract_strided_slice %30 {offsets = [0, 24], sizes = [64, 8], strides = [1, 1]} : vector<64x96xbf16> to vector<64x8xbf16>
    %48 = vector.extract_strided_slice %30 {offsets = [0, 32], sizes = [64, 8], strides = [1, 1]} : vector<64x96xbf16> to vector<64x8xbf16>
    %49 = vector.extract_strided_slice %30 {offsets = [0, 40], sizes = [64, 8], strides = [1, 1]} : vector<64x96xbf16> to vector<64x8xbf16>
    %cst_18 = arith.constant dense<0.000000e+00> : vector<64x64xf32>
    %50 = tpu.matmul %47, %48, %cst_18 {dimension_numbers = #tpu.dot_dimension_numbers<[1], [1], [0], [0], [0, 0, 1, 0], [], []>} : vector<64x8xbf16>, vector<64x8xbf16>, vector<64x64xf32> -> vector<64x64xf32>
    %cst_19 = arith.constant dense<0xFF800000> : vector<64xf32>
    %51 = vector.multi_reduction <maximumf>, %50, %cst_19 [1] : vector<64x64xf32> to vector<64xf32>
    %52 = vector.shape_cast %51 : vector<64xf32> to vector<64x1xf32>
    %53 = vector.broadcast %52 : vector<64x1xf32> to vector<64x64xf32>
    %54 = arith.subf %50, %53 : vector<64x64xf32>
    %55 = math.exp %54 : vector<64x64xf32>
    %cst_20 = arith.constant dense<0.000000e+00> : vector<64xf32>
    %56 = vector.multi_reduction <add>, %55, %cst_20 [1] : vector<64x64xf32> to vector<64xf32>
    %57 = vector.shape_cast %56 : vector<64xf32> to vector<64x1xf32>
    %58 = tpu.reciprocal %57 {approx = true} : vector<64x1xf32> -> vector<64x1xf32>
    %59 = vector.broadcast %58 : vector<64x1xf32> to vector<64x64xf32>
    %60 = arith.mulf %55, %59 : vector<64x64xf32>
    %61 = arith.truncf %60 : vector<64x64xf32> to vector<64x64xbf16>
    %cst_21 = arith.constant dense<0.000000e+00> : vector<64x8xf32>
    %62 = tpu.matmul %61, %49, %cst_21 {dimension_numbers = #tpu.dot_dimension_numbers<[1], [0], [0], [1], [0, 0, 1, 1], [], []>} : vector<64x64xbf16>, vector<64x8xbf16>, vector<64x8xf32> -> vector<64x8xf32>
    %63 = vector.extract_strided_slice %30 {offsets = [0, 48], sizes = [64, 8], strides = [1, 1]} : vector<64x96xbf16> to vector<64x8xbf16>
    %64 = vector.extract_strided_slice %30 {offsets = [0, 56], sizes = [64, 8], strides = [1, 1]} : vector<64x96xbf16> to vector<64x8xbf16>
    %65 = vector.extract_strided_slice %30 {offsets = [0, 64], sizes = [64, 8], strides = [1, 1]} : vector<64x96xbf16> to vector<64x8xbf16>
    %cst_22 = arith.constant dense<0.000000e+00> : vector<64x64xf32>
    %66 = tpu.matmul %63, %64, %cst_22 {dimension_numbers = #tpu.dot_dimension_numbers<[1], [1], [0], [0], [0, 0, 1, 0], [], []>} : vector<64x8xbf16>, vector<64x8xbf16>, vector<64x64xf32> -> vector<64x64xf32>
    %cst_23 = arith.constant dense<0xFF800000> : vector<64xf32>
    %67 = vector.multi_reduction <maximumf>, %66, %cst_23 [1] : vector<64x64xf32> to vector<64xf32>
    %68 = vector.shape_cast %67 : vector<64xf32> to vector<64x1xf32>
    %69 = vector.broadcast %68 : vector<64x1xf32> to vector<64x64xf32>
    %70 = arith.subf %66, %69 : vector<64x64xf32>
    %71 = math.exp %70 : vector<64x64xf32>
    %cst_24 = arith.constant dense<0.000000e+00> : vector<64xf32>
    %72 = vector.multi_reduction <add>, %71, %cst_24 [1] : vector<64x64xf32> to vector<64xf32>
    %73 = vector.shape_cast %72 : vector<64xf32> to vector<64x1xf32>
    %74 = tpu.reciprocal %73 {approx = true} : vector<64x1xf32> -> vector<64x1xf32>
    %75 = vector.broadcast %74 : vector<64x1xf32> to vector<64x64xf32>
    %76 = arith.mulf %71, %75 : vector<64x64xf32>
    %77 = arith.truncf %76 : vector<64x64xf32> to vector<64x64xbf16>
    %cst_25 = arith.constant dense<0.000000e+00> : vector<64x8xf32>
    %78 = tpu.matmul %77, %65, %cst_25 {dimension_numbers = #tpu.dot_dimension_numbers<[1], [0], [0], [1], [0, 0, 1, 1], [], []>} : vector<64x64xbf16>, vector<64x8xbf16>, vector<64x8xf32> -> vector<64x8xf32>
    %79 = vector.extract_strided_slice %30 {offsets = [0, 72], sizes = [64, 8], strides = [1, 1]} : vector<64x96xbf16> to vector<64x8xbf16>
    %80 = vector.extract_strided_slice %30 {offsets = [0, 80], sizes = [64, 8], strides = [1, 1]} : vector<64x96xbf16> to vector<64x8xbf16>
    %81 = vector.extract_strided_slice %30 {offsets = [0, 88], sizes = [64, 8], strides = [1, 1]} : vector<64x96xbf16> to vector<64x8xbf16>
    %cst_26 = arith.constant dense<0.000000e+00> : vector<64x64xf32>
    %82 = tpu.matmul %79, %80, %cst_26 {dimension_numbers = #tpu.dot_dimension_numbers<[1], [1], [0], [0], [0, 0, 1, 0], [], []>} : vector<64x8xbf16>, vector<64x8xbf16>, vector<64x64xf32> -> vector<64x64xf32>
    %cst_27 = arith.constant dense<0xFF800000> : vector<64xf32>
    %83 = vector.multi_reduction <maximumf>, %82, %cst_27 [1] : vector<64x64xf32> to vector<64xf32>
    %84 = vector.shape_cast %83 : vector<64xf32> to vector<64x1xf32>
    %85 = vector.broadcast %84 : vector<64x1xf32> to vector<64x64xf32>
    %86 = arith.subf %82, %85 : vector<64x64xf32>
    %87 = math.exp %86 : vector<64x64xf32>
    %cst_28 = arith.constant dense<0.000000e+00> : vector<64xf32>
    %88 = vector.multi_reduction <add>, %87, %cst_28 [1] : vector<64x64xf32> to vector<64xf32>
    %89 = vector.shape_cast %88 : vector<64xf32> to vector<64x1xf32>
    %90 = tpu.reciprocal %89 {approx = true} : vector<64x1xf32> -> vector<64x1xf32>
    %91 = vector.broadcast %90 : vector<64x1xf32> to vector<64x64xf32>
    %92 = arith.mulf %87, %91 : vector<64x64xf32>
    %93 = arith.truncf %92 : vector<64x64xf32> to vector<64x64xbf16>
    %cst_29 = arith.constant dense<0.000000e+00> : vector<64x8xf32>
    %94 = tpu.matmul %93, %81, %cst_29 {dimension_numbers = #tpu.dot_dimension_numbers<[1], [0], [0], [1], [0, 0, 1, 1], [], []>} : vector<64x64xbf16>, vector<64x8xbf16>, vector<64x8xf32> -> vector<64x8xf32>
    %95 = tpu.concatenate %46, %62, %78, %94 in 1 : vector<64x8xf32>, vector<64x8xf32>, vector<64x8xf32>, vector<64x8xf32> -> vector<64x32xf32>
    %96 = arith.truncf %95 : vector<64x32xf32> to vector<64x32xbf16>
    %97 = vector.extract_strided_slice %22 {offsets = [0, 96], sizes = [32, 32], strides = [1, 1]} : vector<32x128xbf16> to vector<32x32xbf16>
    %cst_30 = arith.constant dense<0.000000e+00> : vector<64x32xf32>
    %98 = tpu.matmul %96, %97, %cst_30 {dimension_numbers = #tpu.dot_dimension_numbers<[1], [0], [0], [1], [0, 0, 1, 1], [], []>} : vector<64x32xbf16>, vector<32x32xbf16>, vector<64x32xf32> -> vector<64x32xf32>
    %99 = vector.extract_strided_slice %23 {offsets = [0, 96], sizes = [1, 32], strides = [1, 1]} : vector<1x128xf32> to vector<1x32xf32>
    %100 = vector.broadcast %99 : vector<1x32xf32> to vector<64x32xf32>
    %101 = arith.addf %98, %100 : vector<64x32xf32>
    %102 = arith.addf %2, %101 : vector<64x32xf32>
    %103 = tpu.transpose %102, [1, 0] : vector<64x32xf32> -> vector<32x64xf32>
    %c0_31 = arith.constant 0 : index
    %c0_32 = arith.constant 0 : index
    %c0_33 = arith.constant 0 : index
    %104 = vector.load %arg5[%c0_31, %c0_32, %c0_33] : memref<1x32x64xf32, #tpu.memory_space<vmem>>, vector<1x32x64xf32>
    %105 = vector.shape_cast %104 : vector<1x32x64xf32> to vector<32x64xf32>
    %106 = vector.shape_cast %103 : vector<32x64xf32> to vector<1x32x64xf32>
    tpu.vector_store %arg5[%c0_31, %c0_32, %c0_33], %106 {strides = array<i32>} : memref<1x32x64xf32, #tpu.memory_space<vmem>>, vector<1x32x64xf32>,
    return
  }
  func.func @transform_0(%arg0: i32) -> (i32, i32, i32) {
    %c0_i32 = arith.constant 0 : i32
    %c0_i32_0 = arith.constant 0 : i32
    %c0_i32_1 = arith.constant 0 : i32
    return %arg0, %c0_i32, %c0_i32_0 : i32, i32, i32
  }
  func.func @transform_1(%arg0: i32) -> (i32, i32) {
    %c0_i32 = arith.constant 0 : i32
    %c0_i32_0 = arith.constant 0 : i32
    %c0_i32_1 = arith.constant 0 : i32
    return %c0_i32, %c0_i32_0 : i32, i32
  }
  func.func @transform_2(%arg0: i32) -> (i32, i32) {
    %c0_i32 = arith.constant 0 : i32
    %c0_i32_0 = arith.constant 0 : i32
    %c0_i32_1 = arith.constant 0 : i32
    return %c0_i32, %c0_i32_0 : i32, i32
  }
  func.func @transform_3(%arg0: i32) -> (i32, i32) {
    %c0_i32 = arith.constant 0 : i32
    %c0_i32_0 = arith.constant 0 : i32
    %c0_i32_1 = arith.constant 0 : i32
    return %c0_i32, %c0_i32_0 : i32, i32
  }
  func.func @transform_4(%arg0: i32) -> (i32, i32, i32) {
    %c0_i32 = arith.constant 0 : i32
    %c0_i32_0 = arith.constant 0 : i32
    %c0_i32_1 = arith.constant 0 : i32
    return %arg0, %c0_i32, %c0_i32_0 : i32, i32, i32
  }
}

</mosaic_0001>

<bundles_post_ra>
// kernel: self_attention_forward.1
= control target key start
LH: loop header
LB: loop body
LE: loop exit
PB: predicated region body
PF: predicated region fallthrough
CT: control target
= control target key end

     0   :  { %s2630_s15 = smov 0   ;;  %s3213_s0 = inlined_call_operand.vmem [shape: f32[4,32,64], index: 0, kind: input, shape index: {}]   ;;  %s3214_s1 = inlined_call_operand.vmem [shape: bf16[32,128], index: 1, kind: input, shape index: {}]   ;;  %s3215_s2 = inlined_call_operand.vmem [shape: f32[1,128], index: 2, kind: input, shape index: {}]   ;;  %s3216_s3 = inlined_call_operand.vmem [shape: f32[32,32], index: 3, kind: input, shape index: {}]   ;;  %s3217_s4 = inlined_call_operand.vmem [shape: f32[4,32,64], index: 4, kind: output, shape index: {}]  }
   0x1 LB: > { %s2026_s16 = sadd.s32 4294967295, %s2586_s15   ;;  %p2030_p0 = scmp.ge.s32.totalorder %s2586_s15, 1  ;;  %s2586_s15 = sphi %s2630_s15, %s14_s15  }
   0x2   : > { %p162_p1 = scmp.lt.s32.totalorder %s2586_s15, 5 }
   0x4   : > { %p163_p2 = pnand %p2030_p0, %p162_p1 }
   0x5   : > { %p188_p3 = scmp.lt.s32.totalorder (!%p163_p2), %s2026_s16, 3  ;;  %s2590_s9 = smov (!%p163_p2), 120  }
   0x6   : > { %166 = sbr.rel (%p163_p2) target bundleno = 3700 (0xe74), region = 36  ;;  %s2591_s10 = smov (!%p163_p2), 112  }
   0x7   : > { %s2592_s11 = smov (!%p163_p2), 96   ;;  %s2593_s12 = smov (!%p163_p2), 104  }
   0x8   : > { %s2594_s13 = smov (!%p163_p2), 88   ;;  %s2595_s14 = smov (!%p163_p2), 72  }
   0x9   : > { %s2596_s18 = smov (!%p163_p2), 80   ;;  %s2597_s19 = smov (!%p163_p2), 64  }
   0xa   : > { %s2599_s21 = smov (!%p163_p2), 56   ;;  %s2600_s22 = smov (!%p163_p2), 40  }
   0xb   : > { %s3224_s16 = smov (!%p188_p3, %s2026_s16), 3  ;;  %v289_v4 = vld [vmem:[%s3216_s3 + $0x18] sm:$0xff]  ;;  %v2588_v5 = vmov 0.0   ;;  %v288_v6 = vld [vmem:[%s3216_s3 + $0x10] sm:$0xff]  ;;  %v287_v7 = vld [vmem:[%s3216_s3 + $0x8] sm:$0xff]  ;;  %vm2589_vm0 = vmmov 0  }
   0xc   : > { %s2082_s17 = sshll.u32 %s3224_s16, 5  ;;  %2170 = vmatprep.subr.mxu0 %v2588_v5  ;;  %2181 = vmatprep.subr.mxu1 %v2588_v5  ;;  %v286_v8 = vld [vmem:[%s3216_s3] sm:$0xff]  ;;  %vm235_vm1 = vcmask 261120   ;;  %vm585_vm2 = vcmask 64512   ;;  %vm675_vm3 = vcmask 523264   ;;  %s2601_s23 = smov 8  }
   0xd   : > { %s192_s20 = scalar_lea.vmem %s3213_s0, %s2082_s17  ;;  %2171 = vmatpush3.msra.mxu0 %v289_v4  ;;  %2182 = vmatpush3.msra.mxu1 %v289_v4  ;;  %v2446_v4 = vld [vmem:[%s3214_s1] sm:$0xff]   ;;  %s2602_s24 = smov 16   ;;  %vm1819_vm4 = vcmask 130048   ;;  %vm1828_vm5 = vcmask 195584  }
   0xe   : > { %v199_v0 = vld [vmem:[%s192_s20] sm:$0xff]  ;;  %v200_v1 = vld [vmem:[%s192_s20 + $0x8] sm:$0xff]  ;;  %v201_v2 = vld [vmem:[%s192_s20 + $0x10] sm:$0xff]  ;;  %2172 = vmatprep.subr.mxu0 %v2588_v5  ;;  %2183 = vmatprep.subr.mxu1 %v2588_v5  ;;  %s2603_s27 = smov 32   ;;  %s2604_s30 = smov 24  }
   0xf   : > { %203 = vxpose.xlu0.b32.start [1/4] (short) (narrow) %v199_v0, 64  ;;  %v202_v3 = vld [vmem:[%s192_s20 + $0x18] sm:$0xff]  ;;  %2173 = vmatpush3.msra.mxu0 %v288_v6  ;;  %s2598_s20 = smov 48  }
  0x10   : > { %2184 = vmatpush3.msra.mxu1 %v288_v6  ;;  %2174 = vmatprep.subr.mxu0 %v2588_v5 }
  0x11   : > { %2185 = vmatprep.subr.mxu1 %v2588_v5  ;;  %2175 = vmatpush3.msra.mxu0 %v287_v7 }
  0x12   : > { %2178 = vmatprep.mubr.msk.f32.mxu0 %vm2589_vm0, %v2588_v5  ;;  %2176 = vmatprep.subr.mxu0 %v2588_v5 }
  0x13   : > { %204 = vxpose.xlu0.b32.cont [2/4] (short) (narrow) %v200_v1, 64  ;;  %2186 = vmatpush3.msra.mxu1 %v287_v7 }
  0x14   : > { %2177 = vmatpush3.msra.mxu0 %v286_v8  ;;  %2187 = vmatprep.subr.mxu1 %v2588_v5 }
  0x15   : > { %2188 = vmatpush3.msra.mxu1 %v286_v8  ;;  %2189 = vmatprep.mubr.msk.f32.mxu1 %vm2589_vm0, %v2588_v5 }
  0x17   : > { %205 = vxpose.xlu0.b32.cont [3/4] (short) (narrow) %v201_v2, 64 }
  0x1b   : > { %206 = vxpose.xlu0.b32.end [4/4] (short) (narrow) %v202_v3, 64  ;;  %v2445_v3 = vld [vmem:[%s3214_s1 + $0x8] sm:$0xff]  }
  0x1c   : > { %2192 = vmatprep.subr.bf16.mxu0 %v2445_v3 }
  0x8b   : > { %v2658_v9 = vpop.trf.xlu0 }
  0x8c   : > { %v257_v14 = vmul.f32 %v2658_v9, %v2658_v9  ;;  %v236_v18 = vsel %vm235_vm1, %v2658_v9, 0.0 }
  0x8e   : > { %v265_v23 = vsel %vm235_vm1, %v257_v14, 0.0 }
  0x8f   : > { %v2660_v10 = vpop.trf.xlu0 }
  0x90   : > { %v258_v13 = vmul.f32 %v2660_v10, %v2660_v10  ;;  %v237_v15 = vsel %vm235_vm1, %v2660_v10, 0.0 }
  0x91   : > { %v238_v22 = vadd.f32 %v237_v15, %v236_v18 }
  0x92   : > { %v266_v19 = vsel %vm235_vm1, %v258_v13, 0.0 }
  0x93   : > { %v2662_v11 = vpop.trf.xlu0  ;;  %v267_v27 = vadd.f32 %v266_v19, %v265_v23 }
  0x94   : > { %v259_v16 = vmul.f32 %v2662_v11, %v2662_v11  ;;  %v239_v20 = vsel %vm235_vm1, %v2662_v11, 0.0 }
  0x95   : > { %v240_v28 = vadd.f32 %v239_v20, %v238_v22 }
  0x96   : > { %v268_v24 = vsel %vm235_vm1, %v259_v16, 0.0  ;;  %v439_v16 = vlaneseq }
  0x97   : > { %v2664_v12 = vpop.trf.xlu0  ;;  %v269_v33 = vadd.f32 %v268_v24, %v267_v27 }
  0x98   : > { %v260_v21 = vmul.f32 %v2664_v12, %v2664_v12  ;;  %v241_v25 = vsel %vm235_vm1, %v2664_v12, 0.0  ;;  %v440_v19 = vshrl.u32 %v439_v16, 7 }
  0x99   : > { %v242_v34 = vadd.f32 %v241_v25, %v240_v28 }
  0x9a   : > { %v270_v30 = vsel %vm235_vm1, %v260_v21, 0.0  ;;  %v441_v20 = vsub.s32 0, %v440_v19 }
  0x9b   : > { %v2674_v17 = vpop.trf.xlu0  ;;  %v271_v37 = vadd.f32 %v270_v30, %v269_v33 }
  0x9c   : > { %v261_v26 = vmul.f32 %v2674_v17, %v2674_v17  ;;  %v243_v31 = vsel %vm235_vm1, %v2674_v17, 0.0 }
  0x9d   : > { %v244_v38 = vadd.f32 %v243_v31, %v242_v34 }
  0x9e   : > { %v272_v35 = vsel %vm235_vm1, %v261_v26, 0.0 }
  0x9f   : > { %v2689_v29 = vpop.trf.xlu0  ;;  %v273_v43 = vadd.f32 %v272_v35, %v271_v37 }
  0xa0   : > { %v262_v32 = vmul.f32 %v2689_v29, %v2689_v29  ;;  %v245_v36 = vsel %vm235_vm1, %v2689_v29, 0.0 }
  0xa1   : > { %v246_v44 = vadd.f32 %v245_v36, %v244_v38 }
  0xa2   : > { %v274_v40 = vsel %vm235_vm1, %v262_v32, 0.0 }
  0xa3   : > { %v2699_v39 = vpop.trf.xlu0  ;;  %v275_v46 = vadd.f32 %v274_v40, %v273_v43 }
  0xa4   : > { %v247_v41 = vsel %vm235_vm1, %v2699_v39, 0.0  ;;  %v263_v42 = vmul.f32 %v2699_v39, %v2699_v39 }
  0xa5   : > { %v248_v47 = vadd.f32 %v247_v41, %v246_v44 }
  0xa6   : > { %v276_v45 = vsel %vm235_vm1, %v263_v42, 0.0 }
  0xa7   : > { %v2707_v48 = vpop.trf.xlu0  ;;  %v277_v51 = vadd.f32 %v276_v45, %v275_v46 }
  0xa8   : > { %v249_v49 = vsel %vm235_vm1, %v2707_v48, 0.0  ;;  %v264_v50 = vmul.f32 %v2707_v48, %v2707_v48 }
  0xa9   : > { %v250_v52 = vadd.f32 %v249_v49, %v248_v47 }
  0xaa   : > { %v278_v53 = vsel %vm235_vm1, %v264_v50, 0.0  ;;  %v2037_v50 = vld [vmem:[%s3215_s2] ss:$0 sm:$0xff] }
  0xab   : > { %v251_v54 = vrot.slane %v250_v52, 4  ;;  %v279_v55 = vadd.f32 %v278_v53, %v277_v51 }
  0xad   : > { %v252_v56 = vadd.f32 %v251_v54, %v250_v52  ;;  %v280_v57 = vrot.slane %v279_v55, 4 }
  0xaf   : > { %v253_v58 = vrot.slane %v252_v56, 2  ;;  %v281_v59 = vadd.f32 %v280_v57, %v279_v55 }
  0xb1   : > { %v254_v60 = vadd.f32 %v253_v58, %v252_v56  ;;  %v282_v61 = vrot.slane %v281_v59, 2 }
  0xb3   : > { %v255_v62 = vrot.slane %v254_v60, 1  ;;  %v283_v63 = vadd.f32 %v282_v61, %v281_v59 }
  0xb5   : > { %v256_v0 = vadd.f32 %v255_v62, %v254_v60  ;;  %v284_v1 = vrot.slane %v283_v63, 1 }
  0xb7   : > { %2179 = vmatmul.mubr.msk.f32.vlgmr.msra.gmra.mxu0 %vm235_vm1, %v256_v0  ;;  %v285_v2 = vadd.f32 %v284_v1, %v283_v63 }
  0xb8   : > { %2193 = vmatpush3.bf16.msra.mxu0 %v2445_v3 }
  0xb9   : > { %2190 = vmatmul.mubr.msk.f32.vlgmr.msra.gmra.mxu1 %vm235_vm1, %v285_v2  ;;  %2194 = vmatprep.subr.bf16.mxu0 %v2446_v4 }
  0xbc   : > { %2195 = vmatpush3.bf16.msra.mxu0 %v2446_v4 }
 0x177   : > { %v359_v5 = vpop.f32.mrf.mxu0 }
 0x178   : > { %v436_v6 = vmul.f32 %v359_v5, %v359_v5  ;;  %v442_v21 = vrot.slane %v359_v5, %v441_v20 }
 0x179   : > { %v2180_v7 = vpop.f32.mrf.mxu0  ;;  %v432_v8 = vpop.f32.mrf.mxu1 }
 0x17a   : > { %v437_v13 = vsub.f32 %v432_v8, %v436_v6  ;;  %v443_v23 = vsub.f32 %v2658_v9, %v442_v21  ;;  %v444_v25 = vsub.f32 %v2660_v10, %v442_v21  ;;  %v445_v26 = vsub.f32 %v2662_v11, %v442_v21 }
 0x17b   : > { %v2191_v14 = vpop.f32.mrf.mxu1  ;;  %v446_v27 = vsub.f32 %v2664_v12, %v442_v21  ;;  %v447_v28 = vsub.f32 %v2674_v17, %v442_v21  ;;  %v448_v30 = vsub.f32 %v2689_v29, %v442_v21  ;;  %v449_v41 = vsub.f32 %v2699_v39, %v442_v21 }
 0x17c   : > { %v438_v15 = vmax.f32 %v437_v13, 0.0  ;;  %v450_v42 = vsub.f32 %v2707_v48, %v442_v21 }
 0x17e   : > { %v451_v18 = vadd.f32 1e-05, %v438_v15 }
 0x180   : > { %2447 = vrsqrt.f32 %v451_v18 }
 0x18d   : > { %v2448_v22 = vpop.eup %2447 }
 0x18e   : > { %v456_v24 = vrot.slane %v2448_v22, %v441_v20 }
 0x190   : > { %v457_v31 = vmul.f32 %v456_v24, %v443_v23  ;;  %v458_v32 = vmul.f32 %v456_v24, %v444_v25  ;;  %v459_v33 = vmul.f32 %v456_v24, %v445_v26  ;;  %v460_v34 = vmul.f32 %v456_v24, %v446_v27 }
 0x191   : > { %v461_v35 = vmul.f32 %v456_v24, %v447_v28  ;;  %v462_v36 = vmul.f32 %v456_v24, %v448_v30  ;;  %v463_v43 = vmul.f32 %v456_v24, %v449_v41  ;;  %v464_v44 = vmul.f32 %v456_v24, %v450_v42 }
 0x192   : > { %v470_v37 = vpack.c.bf16 %v458_v32, %v457_v31  ;;  %v471_v38 = vpack.c.bf16 %v460_v34, %v459_v33 }
 0x193   : > { %v472_v40 = vpack.c.bf16 %v462_v36, %v461_v35  ;;  %v473_v45 = vpack.c.bf16 %v464_v44, %v463_v43 }
 0x194   : > { %2196 = vmatprep.mubr.msk.bf16.mxu0 %vm235_vm1, %v470_v37 }
 0x195   : > { %2197 = vmatmul.mubr.msk.bf16.vlgmr.msra.gmra.mxu0 %vm235_vm1, %v471_v38 }
 0x196   : > { %2200 = vmatprep.mubr.msk.bf16.mxu0 %vm235_vm1, %v472_v40 }
 0x19d   : > { %2201 = vmatmul.mubr.msk.bf16.gmra.mxu0 %vm235_vm1, %v473_v45 }
 0x255   : > { %v2198_v46 = vpop.f32.mrf.mxu0 }
 0x256   : > { %v547_v2 = vadd.f32 %v2198_v46, %v2037_v50 }
 0x257   : > { %v538_v47 = vpop.f32.mrf.mxu0 }
 0x258   : > { %v539_v52 = vadd.f32 %v2037_v50, %v538_v47 }
 0x259   : > { %v2199_v49 = vpop.f32.mrf.mxu0 }
 0x25a   : > { %v550_v0 = vadd.f32 %v2199_v49, %v2037_v50 }
 0x25b   : > { %v541_v51 = vpop.f32.mrf.mxu0 }
 0x25c   : > { %v542_v53 = vadd.f32 %v2037_v50, %v541_v51  ;;  %v2747_v3 = vpack.c.bf16 %v550_v0, %v547_v2 }
 0x25d   : > { %v2202_v54 = vpop.f32.mrf.mxu0 }
 0x25e   : > { %v2737_v55 = vpack.c.bf16 %v542_v53, %v539_v52  ;;  %v563_v58 = vadd.f32 %v2202_v54, %v2037_v50 }
 0x25f   : > { %v554_v56 = vpop.f32.mrf.mxu0 }
 0x260   : > { %2212 = vmatprep.mubr.msk.bf16.mxu1 %vm585_vm2, %v2737_v55  ;;  %v555_v63 = vadd.f32 %v2037_v50, %v554_v56 }
 0x261   : > { %v2203_v57 = vpop.f32.mrf.mxu0 }
 0x262   : > { %v566_v59 = vadd.f32 %v2203_v57, %v2037_v50 }
 0x263   : > { %v557_v60 = vpop.f32.mrf.mxu0 }
 0x264   : > { %v2741_v61 = vpack.c.bf16 %v566_v59, %v563_v58  ;;  %v558_v62 = vadd.f32 %v2037_v50, %v557_v60 }
 0x266   : > { %583 = vrot.lane.b32.xlu1 %v2741_v61, %s2590_s9  ;;  %v2744_v1 = vpack.c.bf16 %v558_v62, %v555_v63 }
 0x26a   : > { %581 = vrot.lane.b32.xlu1 %v2744_v1, %s2590_s9 }
 0x26e   : > { %579 = vrot.lane.b32.xlu1 %v2747_v3, %s2590_s9 }
 0x272   : > { %577 = vrot.lane.b32.xlu1 %v2737_v55, %s2590_s9  ;;  %s197_s9 = scalar_lea.vmem %s3217_s4, %s2082_s17 }
 0x276   : > { %774 = vrot.lane.b32.xlu1 %v2741_v61, %s2591_s10 }
 0x2d8   : > { %v584_v4 = vpop.permute.xlu1 %583 }
 0x2d9   : > { %2344 = vmatprep.subr.msk.bf16.mxu1 %vm585_vm2, %v584_v4  ;;  %v608_v5 = vsel %vm585_vm2, %v584_v4, 0 }
 0x2da   : > { %2205 = vmatpush3.bf16.xpose.msra.mxu1 %v608_v5 }
 0x2dc   : > { %v582_v6 = vpop.permute.xlu1 %581 }
 0x2dd   : > { %2345 = vmatprep.subr.msk.bf16.mxu1 %vm585_vm2, %v582_v6  ;;  %v605_v8 = vsel %vm585_vm2, %v582_v6, 0 }
 0x2e0   : > { %v580_v7 = vpop.permute.xlu1 %579 }
 0x2e1   : > { %v602_v15 = vsel %vm585_vm2, %v580_v7, 0 }
 0x2e2   : > { %2207 = vmatpush3.bf16.xpose.msra.mxu1 %v605_v8 }
 0x2e3   : > { %2346 = vmatprep.subr.msk.bf16.mxu1 %vm585_vm2, %v580_v7 }
 0x2e4   : > { %v578_v13 = vpop.permute.xlu1 %577 }
 0x2e5   : > { %v599_v16 = vsel %vm585_vm2, %v578_v13, 0 }
 0x2e8   : > { %v775_v14 = vpop.permute.xlu1 %774 }
 0x2e9   : > { %2220 = vmatprep.subr.bf16.mxu0 %v775_v14 }
 0x2ea   : > { %2209 = vmatpush3.bf16.xpose.msra.mxu1 %v602_v15  ;;  %2221 = vmatpush3.bf16.msra.mxu0 %v775_v14 }
 0x2eb   : > { %2347 = vmatprep.subr.msk.bf16.mxu1 %vm585_vm2, %v578_v13 }
 0x2f2   : > { %2211 = vmatpush3.bf16.xpose.msra.mxu1 %v599_v16 }
 0x2f9   : > { %2213 = vmatmul.mubr.msk.bf16.vlgmr.msra.gmra.mxu1 %vm585_vm2, %v2747_v3 }
 0x2fa   : > { %2216 = vmatprep.mubr.msk.bf16.mxu1 %vm585_vm2, %v2744_v1 }
 0x301   : > { %2217 = vmatmul.mubr.msk.bf16.gmra.mxu1 %vm585_vm2, %v2741_v61 }
 0x3b9   : > { %v2214_v18 = vpop.f32.mrf.mxu1 }
 0x3ba   : > { %v682_v19 = vsel %vm675_vm3, %v2214_v18, -inf }
 0x3bb   : > { %683 = vmax.xlane.f32.xlu1 %v682_v19  ;;  %v644_v20 = vpop.f32.mrf.mxu1 }
 0x3bc   : > { %v676_v21 = vsel %vm675_vm3, %v644_v20, -inf }
 0x3bd   : > { %677 = vmax.xlane.f32.xlu0 %v676_v21  ;;  %v2215_v22 = vpop.f32.mrf.mxu1 }
 0x3be   : > { %v685_v23 = vsel %vm675_vm3, %v2215_v22, -inf }
 0x3bf   : > { %686 = vmax.xlane.f32.xlu1 %v685_v23  ;;  %v647_v24 = vpop.f32.mrf.mxu1 }
 0x3c0   : > { %v679_v25 = vsel %vm675_vm3, %v647_v24, -inf }
 0x3c1   : > { %v2218_v26 = vpop.f32.mrf.mxu1 }
 0x3c2   : > { %v694_v27 = vsel %vm675_vm3, %v2218_v26, -inf }
 0x3c3   : > { %680 = vmax.xlane.f32.xlu1 %v679_v25  ;;  %v660_v28 = vpop.f32.mrf.mxu1 }
 0x3c4   : > { %v688_v30 = vsel %vm675_vm3, %v660_v28, -inf }
 0x3c5   : > { %v2219_v31 = vpop.f32.mrf.mxu1 }
 0x3c6   : > { %v697_v32 = vsel %vm675_vm3, %v2219_v31, -inf }
 0x3c7   : > { %695 = vmax.xlane.f32.xlu1 %v694_v27  ;;  %v663_v33 = vpop.f32.mrf.mxu1 }
 0x3c8   : > { %v691_v34 = vsel %vm675_vm3, %v663_v33, -inf }
 0x3cb   : > { %689 = vmax.xlane.f32.xlu1 %v688_v30 }
 0x3cf   : > { %698 = vmax.xlane.f32.xlu1 %v697_v32 }
 0x3d3   : > { %772 = vrot.lane.b32.xlu0 %v2744_v1, %s2591_s10  ;;  %692 = vmax.xlane.f32.xlu1 %v691_v34 }
 0x3e4   : > { %770 = vrot.lane.b32.xlu1 %v2747_v3, %s2591_s10 }
 0x444   : > { %v684_v35 = vpop.xlane.xlu1 %683 }
 0x445   : > { %v702_v36 = vsub.f32 %v2214_v18, %v684_v35 }
 0x446   : > { %v678_v37 = vpop.xlane.xlu0 %677 }
 0x447   : > { %v712_v38 = vmul.f32 1.442695, %v702_v36  ;;  %v700_v40 = vsub.f32 %v644_v20, %v678_v37 }
 0x448   : > { %v687_v41 = vpop.xlane.xlu1 %686 }
 0x449   : > { %2449 = vpow2.f32 %v712_v38  ;;  %v708_v42 = vmul.f32 1.442695, %v700_v40  ;;  %v703_v43 = vsub.f32 %v2215_v22, %v687_v41 }
 0x44a   : > { %v773_v44 = vpop.permute.xlu0 %772 }
 0x44b   : > { %2451 = vpow2.f32 %v708_v42  ;;  %v714_v45 = vmul.f32 1.442695, %v703_v43  ;;  %2222 = vmatprep.subr.bf16.mxu0 %v773_v44 }
 0x44c   : > { %2223 = vmatpush3.bf16.msra.mxu0 %v773_v44  ;;  %v681_v46 = vpop.xlane.xlu1 %680 }
 0x44d   : > { %2453 = vpow2.f32 %v714_v45  ;;  %v701_v47 = vsub.f32 %v647_v24, %v681_v46 }
 0x44f   : > { %v710_v49 = vmul.f32 1.442695, %v701_v47 }
 0x450   : > { %v696_v50 = vpop.xlane.xlu1 %695 }
 0x451   : > { %2455 = vpow2.f32 %v710_v49  ;;  %v706_v2 = vsub.f32 %v2218_v26, %v696_v50 }
 0x453   : > { %v720_v5 = vmul.f32 1.442695, %v706_v2 }
 0x454   : > { %v690_v51 = vpop.xlane.xlu1 %689 }
 0x455   : > { %v704_v4 = vsub.f32 %v660_v28, %v690_v51  ;;  %2457 = vpow2.f32 %v720_v5 }
 0x456   : > { %v2779_v52 = vpop.eup %2449 }
 0x457   : > { %v730_v53 = vsel %vm675_vm3, %v2779_v52, 0.0  ;;  %v716_v7 = vmul.f32 1.442695, %v704_v4 }
 0x458   : > { %v2783_v54 = vpop.eup %2451  ;;  %v699_v56 = vpop.xlane.xlu1 %698  ;;  %731 = vadd.xlane.f32.xlu1 %v730_v53 }
 0x459   : > { %v724_v59 = vsel %vm675_vm3, %v2783_v54, 0.0  ;;  %v707_v6 = vsub.f32 %v2219_v31, %v699_v56  ;;  %2459 = vpow2.f32 %v716_v7 }
 0x45a   : > { %v2785_v57 = vpop.eup %2453 }
 0x45b   : > { %v733_v58 = vsel %vm675_vm3, %v2785_v57, 0.0  ;;  %v722_v13 = vmul.f32 1.442695, %v707_v6 }
 0x45c   : > { %734 = vadd.xlane.f32.xlu0 %v733_v58  ;;  %725 = vadd.xlane.f32.xlu1 %v724_v59  ;;  %v693_v60 = vpop.xlane.xlu1 %692 }
 0x45d   : > { %v705_v8 = vsub.f32 %v663_v33, %v693_v60  ;;  %2461 = vpow2.f32 %v722_v13 }
 0x45e   : > { %v2456_v62 = vpop.eup %2455 }
 0x45f   : > { %v727_v63 = vsel %vm675_vm3, %v2456_v62, 0.0  ;;  %v718_v14 = vmul.f32 1.442695, %v705_v8 }
 0x460   : > { %728 = vadd.xlane.f32.xlu0 %v727_v63  ;;  %v771_v0 = vpop.permute.xlu1 %770 }
 0x461   : > { %2224 = vmatprep.subr.bf16.mxu0 %v771_v0  ;;  %2463 = vpow2.f32 %v718_v14 }
 0x462   : > { %2225 = vmatpush3.bf16.msra.mxu0 %v771_v0  ;;  %v2798_v15 = vpop.eup %2457 }
 0x463   : > { %v742_v19 = vsel %vm675_vm3, %v2798_v15, 0.0 }
 0x466   : > { %v2800_v16 = vpop.eup %2459 }
 0x467   : > { %v736_v20 = vsel %vm675_vm3, %v2800_v16, 0.0 }
 0x46a   : > { %v2802_v18 = vpop.eup %2461 }
 0x46b   : > { %v745_v22 = vsel %vm675_vm3, %v2802_v18, 0.0 }
 0x46d   : > { %871 = vrot.lane.b32.xlu1 %v2741_v61, %s2592_s11 }
 0x46e   : > { %v2808_v21 = vpop.eup %2463 }
 0x46f   : > { %v739_v23 = vsel %vm675_vm3, %v2808_v21, 0.0 }
 0x471   : > { %869 = vrot.lane.b32.xlu1 %v2744_v1, %s2592_s11 }
 0x476   : > { %768 = vrot.lane.b32.xlu0 %v2737_v55, %s2591_s10 }
 0x495   : > { %743 = vadd.xlane.f32.xlu0 %v742_v19  ;;  %737 = vadd.xlane.f32.xlu1 %v736_v20 }
 0x499   : > { %746 = vadd.xlane.f32.xlu1 %v745_v22  ;;  %740 = vadd.xlane.f32.xlu0 %v739_v23 }
 0x4aa   : > { %865 = vrot.lane.b32.xlu1 %v2737_v55, %s2592_s11 }
 0x4ae   : > { %859 = vrot.lane.b32.xlu1 %v2747_v3, %s2593_s12 }
 0x4af   : > { %867 = vrot.lane.b32.xlu0 %v2747_v3, %s2592_s11 }
 0x4b2   : > { %863 = vrot.lane.b32.xlu1 %v2741_v61, %s2593_s12 }
 0x4b3   : > { %857 = vrot.lane.b32.xlu0 %v2737_v55, %s2593_s12 }
 0x4b6   : > { %1060 = vrot.lane.b32.xlu1 %v2741_v61, %s2594_s13 }
 0x4b7   : > { %861 = vrot.lane.b32.xlu0 %v2744_v1, %s2593_s12 }
 0x4e1   : > { %v732_v24 = vpop.xlane.xlu1 %731 }
 0x4e5   : > { %v735_v25 = vpop.xlane.xlu0 %734  ;;  %v726_v26 = vpop.xlane.xlu1 %725 }
 0x4e6   : > { %2465 = vrcp.f32 %v735_v25 }
 0x4e7   : > { %2467 = vrcp.f32 %v726_v26 }
 0x4e8   : > { %2469 = vrcp.f32 %v732_v24 }
 0x4e9   : > { %v729_v27 = vpop.xlane.xlu0 %728  ;;  %v872_v30 = vpop.permute.xlu1 %871 }
 0x4ea   : > { %2471 = vrcp.f32 %v729_v27  ;;  %v895_v42 = vsel %vm585_vm2, %v872_v30, 0 }
 0x4ed   : > { %v769_v28 = vpop.permute.xlu0 %768  ;;  %v870_v43 = vpop.permute.xlu1 %869 }
 0x4ee   : > { %2226 = vmatprep.subr.bf16.mxu0 %v769_v28  ;;  %v892_v44 = vsel %vm585_vm2, %v870_v43, 0 }
 0x4ef   : > { %2227 = vmatpush3.bf16.msra.mxu0 %v769_v28 }
 0x4f0   : > { %2348 = vmatprep.subr.msk.bf16.mxu0 %vm585_vm2, %v872_v30 }
 0x4f3   : > { %v2466_v31 = vpop.eup %2465 }
 0x4f4   : > { %v2468_v32 = vpop.eup %2467  ;;  %v759_v35 = vmul.f32 %v2466_v31, %v2785_v57 }
 0x4f5   : > { %v2470_v33 = vpop.eup %2469  ;;  %v756_v36 = vmul.f32 %v2468_v32, %v2783_v54 }
 0x4f6   : > { %v758_v38 = vmul.f32 %v2470_v33, %v2779_v52 }
 0x4f7   : > { %v2472_v34 = vpop.eup %2471 }
 0x4f8   : > { %v757_v37 = vmul.f32 %v2472_v34, %v2456_v62  ;;  %v765_v41 = vpack.c.bf16 %v759_v35, %v758_v38 }
 0x4fa   : > { %v764_v40 = vpack.c.bf16 %v757_v37, %v756_v36 }
 0x4fc   : > { %2228 = vmatprep.mubr.msk.bf16.mxu0 %vm675_vm3, %v764_v40 }
 0x4fd   : > { %2229 = vmatmul.mubr.msk.bf16.vlgmr.msra.gmra.mxu0 %vm675_vm3, %v765_v41 }
 0x4fe   : > { %2237 = vmatpush3.bf16.xpose.msra.mxu0 %v895_v42 }
 0x4ff   : > { %2349 = vmatprep.subr.msk.bf16.mxu0 %vm585_vm2, %v870_v43 }
 0x506   : > { %2239 = vmatpush3.bf16.xpose.msra.mxu0 %v892_v44 }
 0x51e   : > { %v744_v45 = vpop.xlane.xlu0 %743  ;;  %v738_v46 = vpop.xlane.xlu1 %737 }
 0x51f   : > { %2473 = vrcp.f32 %v738_v46 }
 0x520   : > { %2475 = vrcp.f32 %v744_v45 }
 0x522   : > { %v741_v47 = vpop.xlane.xlu0 %740  ;;  %v747_v49 = vpop.xlane.xlu1 %746 }
 0x523   : > { %2477 = vrcp.f32 %v741_v47 }
 0x524   : > { %2479 = vrcp.f32 %v747_v49 }
 0x526   : > { %v868_v50 = vpop.permute.xlu0 %867  ;;  %v866_v51 = vpop.permute.xlu1 %865 }
 0x527   : > { %v889_v52 = vsel %vm585_vm2, %v868_v50, 0  ;;  %2350 = vmatprep.subr.msk.bf16.mxu0 %vm585_vm2, %v868_v50  ;;  %v886_v58 = vsel %vm585_vm2, %v866_v51, 0 }
 0x528   : > { %2241 = vmatpush3.bf16.xpose.msra.mxu0 %v889_v52 }
 0x529   : > { %2351 = vmatprep.subr.msk.bf16.mxu0 %vm585_vm2, %v866_v51 }
 0x52a   : > { %v860_v53 = vpop.permute.xlu1 %859  ;;  %v858_v7 = vpop.permute.xlu0 %857 }
 0x52c   : > { %v2474_v54 = vpop.eup %2473 }
 0x52d   : > { %v2476_v57 = vpop.eup %2475  ;;  %v760_v62 = vmul.f32 %v2474_v54, %v2800_v16 }
 0x52e   : > { %v864_v56 = vpop.permute.xlu1 %863  ;;  %v762_v2 = vmul.f32 %v2476_v57, %v2798_v15  ;;  %v862_v8 = vpop.permute.xlu0 %861 }
 0x530   : > { %v2478_v59 = vpop.eup %2477  ;;  %2243 = vmatpush3.bf16.xpose.msra.mxu0 %v886_v58 }
 0x531   : > { %v2480_v60 = vpop.eup %2479  ;;  %v761_v63 = vmul.f32 %v2478_v59, %v2808_v21 }
 0x532   : > { %v1061_v0 = vpop.permute.xlu1 %1060  ;;  %v763_v4 = vmul.f32 %v2480_v60, %v2802_v18 }
 0x533   : > { %2252 = vmatprep.subr.bf16.mxu1 %v1061_v0  ;;  %v766_v5 = vpack.c.bf16 %v761_v63, %v760_v62 }
 0x534   : > { %2253 = vmatpush3.bf16.msra.mxu1 %v1061_v0  ;;  %v767_v6 = vpack.c.bf16 %v763_v4, %v762_v2 }
 0x535   : > { %2232 = vmatprep.mubr.msk.bf16.mxu0 %vm675_vm3, %v766_v5 }
 0x536   : > { %2233 = vmatmul.mubr.msk.bf16.gmra.mxu0 %vm675_vm3, %v767_v6 }
 0x537   : > { %2244 = vmatprep.mubr.msk.bf16.mxu0 %vm585_vm2, %v858_v7 }
 0x53e   : > { %2245 = vmatmul.mubr.msk.bf16.vlgmr.msra.gmra.mxu0 %vm585_vm2, %v860_v53 }
 0x53f   : > { %2248 = vmatprep.mubr.msk.bf16.mxu0 %vm585_vm2, %v862_v8 }
 0x546   : > { %2249 = vmatmul.mubr.msk.bf16.gmra.mxu0 %vm585_vm2, %v864_v56 }
 0x5bd   : > { %v2847_v13 = vpop.f32.mrf.mxu0 }
 0x5bf   : > { %v2849_v14 = vpop.f32.mrf.mxu0 }
 0x5c1   : > { %v2851_v15 = vpop.f32.mrf.mxu0 }
 0x5c3   : > { %v2853_v16 = vpop.f32.mrf.mxu0 }
 0x5f6   : > { %v2855_v18 = vpop.f32.mrf.mxu0 }
 0x5f8   : > { %v2857_v19 = vpop.f32.mrf.mxu0 }
 0x5fa   : > { %v2859_v20 = vpop.f32.mrf.mxu0 }
 0x5fc   : > { %v2861_v21 = vpop.f32.mrf.mxu0 }
 0x5fe   : > { %v2246_v22 = vpop.f32.mrf.mxu0 }
 0x5ff   : > { %v968_v23 = vsel %vm675_vm3, %v2246_v22, -inf }
 0x600   : > { %969 = vmax.xlane.f32.xlu0 %v968_v23  ;;  %v931_v24 = vpop.f32.mrf.mxu0 }
 0x601   : > { %v962_v26 = vsel %vm675_vm3, %v931_v24, -inf }
 0x602   : > { %v2247_v25 = vpop.f32.mrf.mxu0 }
 0x603   : > { %v971_v31 = vsel %vm675_vm3, %v2247_v25, -inf }
 0x604   : > { %963 = vmax.xlane.f32.xlu0 %v962_v26  ;;  %v934_v27 = vpop.f32.mrf.mxu0 }
 0x605   : > { %v965_v28 = vsel %vm675_vm3, %v934_v27, -inf }
 0x606   : > { %966 = vmax.xlane.f32.xlu1 %v965_v28  ;;  %v2250_v30 = vpop.f32.mrf.mxu0 }
 0x607   : > { %v980_v33 = vsel %vm675_vm3, %v2250_v30, -inf }
 0x608   : > { %972 = vmax.xlane.f32.xlu0 %v971_v31  ;;  %v947_v32 = vpop.f32.mrf.mxu0 }
 0x609   : > { %v974_v37 = vsel %vm675_vm3, %v947_v32, -inf }
 0x60a   : > { %981 = vmax.xlane.f32.xlu1 %v980_v33  ;;  %v2251_v34 = vpop.f32.mrf.mxu0 }
 0x60b   : > { %v983_v35 = vsel %vm675_vm3, %v2251_v34, -inf }
 0x60c   : > { %984 = vmax.xlane.f32.xlu0 %v983_v35  ;;  %v950_v36 = vpop.f32.mrf.mxu0 }
 0x60d   : > { %v977_v38 = vsel %vm675_vm3, %v950_v36, -inf }
 0x60e   : > { %975 = vmax.xlane.f32.xlu1 %v974_v37 }
 0x610   : > { %978 = vmax.xlane.f32.xlu0 %v977_v38 }
 0x61f   : > { %1056 = vrot.lane.b32.xlu1 %v2747_v3, %s2594_s13 }
 0x626   : > { %1058 = vrot.lane.b32.xlu0 %v2744_v1, %s2594_s13 }
 0x689   : > { %v970_v40 = vpop.xlane.xlu0 %969 }
 0x68a   : > { %v988_v41 = vsub.f32 %v2246_v22, %v970_v40 }
 0x68c   : > { %v998_v42 = vmul.f32 1.442695, %v988_v41 }
 0x68d   : > { %v964_v43 = vpop.xlane.xlu0 %963 }
 0x68e   : > { %2481 = vpow2.f32 %v998_v42  ;;  %v986_v44 = vsub.f32 %v931_v24, %v964_v43 }
 0x68f   : > { %v967_v45 = vpop.xlane.xlu1 %966 }
 0x690   : > { %v994_v46 = vmul.f32 1.442695, %v986_v44  ;;  %v987_v47 = vsub.f32 %v934_v27, %v967_v45 }
 0x691   : > { %v973_v49 = vpop.xlane.xlu0 %972 }
 0x692   : > { %2483 = vpow2.f32 %v994_v46  ;;  %v989_v50 = vsub.f32 %v2247_v25, %v973_v49  ;;  %v996_v52 = vmul.f32 1.442695, %v987_v47 }
 0x693   : > { %v982_v51 = vpop.xlane.xlu1 %981 }
 0x694   : > { %v1000_v53 = vmul.f32 1.442695, %v989_v50  ;;  %v992_v8 = vsub.f32 %v2250_v30, %v982_v51 }
 0x695   : > { %v985_v54 = vpop.xlane.xlu0 %984 }
 0x696   : > { %2485 = vpow2.f32 %v1000_v53  ;;  %v993_v22 = vsub.f32 %v2251_v34, %v985_v54  ;;  %v1006_v24 = vmul.f32 1.442695, %v992_v8 }
 0x697   : > { %2487 = vpow2.f32 %v996_v52  ;;  %v976_v56 = vpop.xlane.xlu1 %975 }
 0x698   : > { %v990_v7 = vsub.f32 %v947_v32, %v976_v56  ;;  %v1008_v25 = vmul.f32 1.442695, %v993_v22 }
 0x699   : > { %v979_v57 = vpop.xlane.xlu0 %978 }
 0x69a   : > { %v1002_v23 = vmul.f32 1.442695, %v990_v7  ;;  %v991_v26 = vsub.f32 %v950_v36, %v979_v57 }
 0x69b   : > { %v2875_v58 = vpop.eup %2481  ;;  %v1057_v63 = vpop.permute.xlu1 %1056 }
 0x69c   : > { %v1016_v59 = vsel %vm675_vm3, %v2875_v58, 0.0  ;;  %2489 = vpow2.f32 %v1002_v23  ;;  %v1004_v27 = vmul.f32 1.442695, %v991_v26 }
 0x69d   : > { %1017 = vadd.xlane.f32.xlu1 %v1016_v59  ;;  %v1059_v60 = vpop.permute.xlu0 %1058  ;;  %2491 = vpow2.f32 %v1006_v24 }
 0x69e   : > { %2254 = vmatprep.subr.bf16.mxu1 %v1059_v60  ;;  %2493 = vpow2.f32 %v1008_v25 }
 0x69f   : > { %v2879_v62 = vpop.eup %2483  ;;  %2255 = vmatpush3.bf16.msra.mxu1 %v1059_v60  ;;  %2495 = vpow2.f32 %v1004_v27 }
 0x6a0   : > { %2256 = vmatprep.subr.bf16.mxu1 %v1057_v63  ;;  %v1010_v0 = vsel %vm675_vm3, %v2879_v62, 0.0 }
 0x6a1   : > { %1011 = vadd.xlane.f32.xlu1 %v1010_v0 }
 0x6a3   : > { %v2486_v2 = vpop.eup %2485  ;;  %2257 = vmatpush3.bf16.msra.mxu1 %v1057_v63 }
 0x6a4   : > { %v1019_v4 = vsel %vm675_vm3, %v2486_v2, 0.0  ;;  %v2488_v5 = vpop.eup %2487 }
 0x6a5   : > { %1020 = vadd.xlane.f32.xlu0 %v1019_v4  ;;  %v1013_v6 = vsel %vm675_vm3, %v2488_v5, 0.0 }
 0x6a9   : > { %1014 = vadd.xlane.f32.xlu0 %v1013_v6  ;;  %v2891_v28 = vpop.eup %2489 }
 0x6aa   : > { %v2893_v31 = vpop.eup %2491  ;;  %v1022_v33 = vsel %vm675_vm3, %v2891_v28, 0.0 }
 0x6ab   : > { %v2897_v35 = vpop.eup %2493  ;;  %v1028_v30 = vsel %vm675_vm3, %v2893_v31, 0.0 }
 0x6ac   : > { %v1031_v32 = vsel %vm675_vm3, %v2897_v35, 0.0  ;;  %v2903_v34 = vpop.eup %2495 }
 0x6ad   : > { %v1025_v36 = vsel %vm675_vm3, %v2903_v34, 0.0 }
 0x6b2   : > { %1157 = vrot.lane.b32.xlu1 %v2741_v61, %s2595_s14 }
 0x6b6   : > { %1155 = vrot.lane.b32.xlu1 %v2744_v1, %s2595_s14 }
 0x6bf   : > { %1054 = vrot.lane.b32.xlu0 %v2737_v55, %s2594_s13 }
 0x6da   : > { %1023 = vadd.xlane.f32.xlu1 %v1022_v33 }
 0x6de   : > { %1029 = vadd.xlane.f32.xlu0 %v1028_v30  ;;  %1032 = vadd.xlane.f32.xlu1 %v1031_v32 }
 0x6e2   : > { %1026 = vadd.xlane.f32.xlu0 %v1025_v36 }
 0x6ef   : > { %1151 = vrot.lane.b32.xlu1 %v2737_v55, %s2595_s14 }
 0x6f3   : > { %1145 = vrot.lane.b32.xlu1 %v2747_v3, %s2596_s18 }
 0x6f7   : > { %1149 = vrot.lane.b32.xlu1 %v2741_v61, %s2596_s18 }
 0x6f8   : > { %1153 = vrot.lane.b32.xlu0 %v2747_v3, %s2595_s14 }
 0x6fb   : > { %1346 = vrot.lane.b32.xlu1 %v2741_v61, %s2597_s19 }
 0x6fc   : > { %1143 = vrot.lane.b32.xlu0 %v2737_v55, %s2596_s18 }
 0x700   : > { %1147 = vrot.lane.b32.xlu0 %v2744_v1, %s2596_s18 }
 0x726   : > { %v1018_v37 = vpop.xlane.xlu1 %1017 }
 0x72a   : > { %v1012_v38 = vpop.xlane.xlu1 %1011 }
 0x72e   : > { %v1021_v40 = vpop.xlane.xlu0 %1020  ;;  %v1158_v43 = vpop.permute.xlu1 %1157 }
 0x72f   : > { %2497 = vrcp.f32 %v1021_v40  ;;  %v1181_v56 = vsel %vm585_vm2, %v1158_v43, 0 }
 0x730   : > { %2499 = vrcp.f32 %v1012_v38 }
 0x731   : > { %2501 = vrcp.f32 %v1018_v37 }
 0x732   : > { %v1015_v41 = vpop.xlane.xlu0 %1014  ;;  %v1156_v57 = vpop.permute.xlu1 %1155 }
 0x733   : > { %2503 = vrcp.f32 %v1015_v41  ;;  %v1178_v59 = vsel %vm585_vm2, %v1156_v57, 0 }
 0x736   : > { %v1055_v42 = vpop.permute.xlu0 %1054 }
 0x737   : > { %2258 = vmatprep.subr.bf16.mxu1 %v1055_v42 }
 0x738   : > { %2259 = vmatpush3.bf16.msra.mxu1 %v1055_v42 }
 0x739   : > { %2352 = vmatprep.subr.msk.bf16.mxu1 %vm585_vm2, %v1158_v43 }
 0x73c   : > { %v2498_v44 = vpop.eup %2497 }
 0x73d   : > { %v2500_v45 = vpop.eup %2499  ;;  %v1045_v49 = vmul.f32 %v2498_v44, %v2486_v2 }
 0x73e   : > { %v2502_v46 = vpop.eup %2501  ;;  %v1042_v50 = vmul.f32 %v2500_v45, %v2879_v62 }
 0x73f   : > { %v1044_v52 = vmul.f32 %v2502_v46, %v2875_v58 }
 0x740   : > { %v2504_v47 = vpop.eup %2503 }
 0x741   : > { %v1043_v51 = vmul.f32 %v2504_v47, %v2488_v5  ;;  %v1051_v54 = vpack.c.bf16 %v1045_v49, %v1044_v52 }
 0x743   : > { %v1050_v53 = vpack.c.bf16 %v1043_v51, %v1042_v50 }
 0x745   : > { %2260 = vmatprep.mubr.msk.bf16.mxu1 %vm675_vm3, %v1050_v53 }
 0x746   : > { %2261 = vmatmul.mubr.msk.bf16.vlgmr.msra.gmra.mxu1 %vm675_vm3, %v1051_v54 }
 0x747   : > { %2269 = vmatpush3.bf16.xpose.msra.mxu1 %v1181_v56 }
 0x748   : > { %2353 = vmatprep.subr.msk.bf16.mxu1 %vm585_vm2, %v1156_v57 }
 0x74f   : > { %2271 = vmatpush3.bf16.xpose.msra.mxu1 %v1178_v59 }
 0x763   : > { %v1024_v60 = vpop.xlane.xlu1 %1023 }
 0x767   : > { %v1030_v62 = vpop.xlane.xlu0 %1029  ;;  %v1033_v63 = vpop.xlane.xlu1 %1032 }
 0x768   : > { %2505 = vrcp.f32 %v1030_v62 }
 0x769   : > { %2507 = vrcp.f32 %v1033_v63 }
 0x76a   : > { %2509 = vrcp.f32 %v1024_v60 }
 0x76b   : > { %v1027_v58 = vpop.xlane.xlu0 %1026  ;;  %v1152_v0 = vpop.permute.xlu1 %1151 }
 0x76c   : > { %2511 = vrcp.f32 %v1027_v58  ;;  %v1172_v24 = vsel %vm585_vm2, %v1152_v0, 0 }
 0x76f   : > { %v1154_v2 = vpop.permute.xlu0 %1153  ;;  %v1146_v4 = vpop.permute.xlu1 %1145 }
 0x770   : > { %v1175_v5 = vsel %vm585_vm2, %v1154_v2, 0  ;;  %2354 = vmatprep.subr.msk.bf16.mxu1 %vm585_vm2, %v1154_v2 }
 0x771   : > { %2273 = vmatpush3.bf16.xpose.msra.mxu1 %v1175_v5 }
 0x772   : > { %2355 = vmatprep.subr.msk.bf16.mxu1 %vm585_vm2, %v1152_v0 }
 0x773   : > { %v1150_v6 = vpop.permute.xlu1 %1149  ;;  %v1144_v37 = vpop.permute.xlu0 %1143 }
 0x775   : > { %v2506_v7 = vpop.eup %2505 }
 0x776   : > { %v2508_v8 = vpop.eup %2507  ;;  %v1048_v26 = vmul.f32 %v2506_v7, %v2893_v31 }
 0x777   : > { %v2510_v22 = vpop.eup %2509  ;;  %v1347_v23 = vpop.permute.xlu1 %1346  ;;  %v1049_v27 = vmul.f32 %v2508_v8, %v2897_v35 }
 0x778   : > { %2284 = vmatprep.subr.bf16.mxu0 %v1347_v23  ;;  %v1046_v33 = vmul.f32 %v2510_v22, %v2891_v28  ;;  %v1148_v38 = vpop.permute.xlu0 %1147 }
 0x779   : > { %v2512_v25 = vpop.eup %2511  ;;  %2275 = vmatpush3.bf16.xpose.msra.mxu1 %v1172_v24  ;;  %2285 = vmatpush3.bf16.msra.mxu0 %v1347_v23  ;;  %v1053_v36 = vpack.c.bf16 %v1049_v27, %v1048_v26 }
 0x77a   : > { %v1047_v30 = vmul.f32 %v2512_v25, %v2903_v34 }
 0x77c   : > { %v1052_v32 = vpack.c.bf16 %v1047_v30, %v1046_v33 }
 0x77e   : > { %2264 = vmatprep.mubr.msk.bf16.mxu1 %vm675_vm3, %v1052_v32 }
 0x77f   : > { %2265 = vmatmul.mubr.msk.bf16.gmra.mxu1 %vm675_vm3, %v1053_v36 }
 0x780   : > { %2276 = vmatprep.mubr.msk.bf16.mxu1 %vm585_vm2, %v1144_v37 }
 0x787   : > { %2277 = vmatmul.mubr.msk.bf16.vlgmr.msra.gmra.mxu1 %vm585_vm2, %v1146_v4 }
 0x788   : > { %2280 = vmatprep.mubr.msk.bf16.mxu1 %vm585_vm2, %v1148_v38 }
 0x78f   : > { %2281 = vmatmul.mubr.msk.bf16.gmra.mxu1 %vm585_vm2, %v1150_v6 }
 0x806   : > { %v2939_v31 = vpop.f32.mrf.mxu1 }
 0x808   : > { %v2941_v28 = vpop.f32.mrf.mxu1 }
 0x80a   : > { %v2943_v35 = vpop.f32.mrf.mxu1 }
 0x80b   : > { %v2390_v34 = vpack.i.bf16 %v2943_v35, %v2939_v31 }
 0x80c   : > { %v2947_v40 = vpop.f32.mrf.mxu1 }
 0x80d   : > { %v2385_v41 = vpack.i.bf16 %v2947_v40, %v2941_v28 }
 0x83f   : > { %v2951_v42 = vpop.f32.mrf.mxu1 }
 0x841   : > { %v2953_v43 = vpop.f32.mrf.mxu1 }
 0x843   : > { %v2955_v44 = vpop.f32.mrf.mxu1 }
 0x845   : > { %v2959_v46 = vpop.f32.mrf.mxu1 }
 0x846   : > { %v3219_v28 = vpack.i.bf16 %v2959_v46, %v2953_v43 }
 0x847   : > { %v2278_v49 = vpop.f32.mrf.mxu1 }
 0x848   : > { %v1254_v50 = vsel %vm675_vm3, %v2278_v49, -inf }
 0x849   : > { %1255 = vmax.xlane.f32.xlu0 %v1254_v50  ;;  %v1217_v51 = vpop.f32.mrf.mxu1 }
 0x84a   : > { %v1248_v53 = vsel %vm675_vm3, %v1217_v51, -inf }
 0x84b   : > { %v2279_v52 = vpop.f32.mrf.mxu1 }
 0x84c   : > { %v1257_v59 = vsel %vm675_vm3, %v2279_v52, -inf }
 0x84d   : > { %1249 = vmax.xlane.f32.xlu0 %v1248_v53  ;;  %v1220_v54 = vpop.f32.mrf.mxu1 }
 0x84e   : > { %v1251_v56 = vsel %vm675_vm3, %v1220_v54, -inf }
 0x84f   : > { %1252 = vmax.xlane.f32.xlu1 %v1251_v56  ;;  %v2282_v57 = vpop.f32.mrf.mxu1 }
 0x850   : > { %v1266_v62 = vsel %vm675_vm3, %v2282_v57, -inf }
 0x851   : > { %1258 = vmax.xlane.f32.xlu0 %v1257_v59  ;;  %v1233_v60 = vpop.f32.mrf.mxu1 }
 0x852   : > { %v1260_v2 = vsel %vm675_vm3, %v1233_v60, -inf }
 0x853   : > { %1267 = vmax.xlane.f32.xlu1 %v1266_v62  ;;  %v2283_v63 = vpop.f32.mrf.mxu1 }
 0x854   : > { %v1269_v58 = vsel %vm675_vm3, %v2283_v63, -inf }
 0x855   : > { %1270 = vmax.xlane.f32.xlu0 %v1269_v58  ;;  %v1236_v0 = vpop.f32.mrf.mxu1 }
 0x856   : > { %v1263_v4 = vsel %vm675_vm3, %v1236_v0, -inf }
 0x857   : > { %1261 = vmax.xlane.f32.xlu1 %v1260_v2 }
 0x859   : > { %1264 = vmax.xlane.f32.xlu0 %v1263_v4 }
 0x868   : > { %1342 = vrot.lane.b32.xlu1 %v2747_v3, %s2597_s19 }
 0x86f   : > { %1344 = vrot.lane.b32.xlu0 %v2744_v1, %s2597_s19 }
 0x8d2   : > { %v1256_v5 = vpop.xlane.xlu0 %1255 }
 0x8d3   : > { %v1274_v6 = vsub.f32 %v2278_v49, %v1256_v5 }
 0x8d5   : > { %v1284_v7 = vmul.f32 1.442695, %v1274_v6 }
 0x8d6   : > { %v1250_v8 = vpop.xlane.xlu0 %1249 }
 0x8d7   : > { %2513 = vpow2.f32 %v1284_v7  ;;  %v1272_v22 = vsub.f32 %v1217_v51, %v1250_v8 }
 0x8d8   : > { %v1253_v23 = vpop.xlane.xlu1 %1252 }
 0x8d9   : > { %v1280_v24 = vmul.f32 1.442695, %v1272_v22  ;;  %v1273_v25 = vsub.f32 %v1220_v54, %v1253_v23 }
 0x8da   : > { %v1259_v26 = vpop.xlane.xlu0 %1258 }
 0x8db   : > { %2515 = vpow2.f32 %v1280_v24  ;;  %v1275_v27 = vsub.f32 %v2279_v52, %v1259_v26  ;;  %v1282_v30 = vmul.f32 1.442695, %v1273_v25 }
 0x8dc   : > { %v1268_v33 = vpop.xlane.xlu1 %1267 }
 0x8dd   : > { %v1286_v32 = vmul.f32 1.442695, %v1275_v27  ;;  %v1278_v4 = vsub.f32 %v2282_v57, %v1268_v33 }
 0x8de   : > { %v1271_v36 = vpop.xlane.xlu0 %1270 }
 0x8df   : > { %2517 = vpow2.f32 %v1286_v32  ;;  %v1279_v5 = vsub.f32 %v2283_v63, %v1271_v36  ;;  %v1292_v7 = vmul.f32 1.442695, %v1278_v4 }
 0x8e0   : > { %2519 = vpow2.f32 %v1282_v30  ;;  %v1262_v37 = vpop.xlane.xlu1 %1261 }
 0x8e1   : > { %v1276_v2 = vsub.f32 %v1233_v60, %v1262_v37  ;;  %v1294_v8 = vmul.f32 1.442695, %v1279_v5 }
 0x8e2   : > { %v1265_v38 = vpop.xlane.xlu0 %1264 }
 0x8e3   : > { %v1288_v6 = vmul.f32 1.442695, %v1276_v2  ;;  %v1277_v22 = vsub.f32 %v1236_v0, %v1265_v38 }
 0x8e4   : > { %v2975_v50 = vpop.eup %2513  ;;  %v1343_v54 = vpop.permute.xlu1 %1342 }
 0x8e5   : > { %v1302_v49 = vsel %vm675_vm3, %v2975_v50, 0.0  ;;  %2521 = vpow2.f32 %v1288_v6  ;;  %v1290_v23 = vmul.f32 1.442695, %v1277_v22 }
 0x8e6   : > { %1303 = vadd.xlane.f32.xlu1 %v1302_v49  ;;  %v1345_v51 = vpop.permute.xlu0 %1344  ;;  %2523 = vpow2.f32 %v1292_v7 }
 0x8e7   : > { %2286 = vmatprep.subr.bf16.mxu0 %v1345_v51  ;;  %2525 = vpow2.f32 %v1294_v8 }
 0x8e8   : > { %v2979_v53 = vpop.eup %2515  ;;  %2287 = vmatpush3.bf16.msra.mxu0 %v1345_v51  ;;  %2527 = vpow2.f32 %v1290_v23 }
 0x8e9   : > { %2288 = vmatprep.subr.bf16.mxu0 %v1343_v54  ;;  %v1296_v52 = vsel %vm675_vm3, %v2979_v53, 0.0 }
 0x8ea   : > { %1297 = vadd.xlane.f32.xlu1 %v1296_v52 }
 0x8ec   : > { %v2518_v56 = vpop.eup %2517  ;;  %2289 = vmatpush3.bf16.msra.mxu0 %v1343_v54 }
 0x8ed   : > { %v1305_v59 = vsel %vm675_vm3, %v2518_v56, 0.0  ;;  %v2520_v62 = vpop.eup %2519 }
 0x8ee   : > { %1306 = vadd.xlane.f32.xlu0 %v1305_v59  ;;  %v1299_v58 = vsel %vm675_vm3, %v2520_v62, 0.0 }
 0x8f2   : > { %1300 = vadd.xlane.f32.xlu0 %v1299_v58  ;;  %v2991_v24 = vpop.eup %2521 }
 0x8f3   : > { %v2993_v25 = vpop.eup %2523  ;;  %v1308_v26 = vsel %vm675_vm3, %v2991_v24, 0.0 }
 0x8f4   : > { %v2997_v27 = vpop.eup %2525  ;;  %v1314_v57 = vsel %vm675_vm3, %v2993_v25, 0.0 }
 0x8f5   : > { %v1317_v60 = vsel %vm675_vm3, %v2997_v27, 0.0  ;;  %v3003_v63 = vpop.eup %2527 }
 0x8f6   : > { %v1311_v0 = vsel %vm675_vm3, %v3003_v63, 0.0 }
 0x8fb   : > { %1443 = vrot.lane.b32.xlu1 %v2741_v61, %s2598_s20 }
 0x8ff   : > { %1441 = vrot.lane.b32.xlu1 %v2744_v1, %s2598_s20 }
 0x908   : > { %1340 = vrot.lane.b32.xlu0 %v2737_v55, %s2597_s19 }
 0x923   : > { %1309 = vadd.xlane.f32.xlu1 %v1308_v26 }
 0x927   : > { %1315 = vadd.xlane.f32.xlu0 %v1314_v57  ;;  %1318 = vadd.xlane.f32.xlu1 %v1317_v60 }
 0x92b   : > { %1312 = vadd.xlane.f32.xlu0 %v1311_v0 }
 0x938   : > { %1437 = vrot.lane.b32.xlu1 %v2737_v55, %s2598_s20 }
 0x93c   : > { %1431 = vrot.lane.b32.xlu1 %v2747_v3, %s2599_s21 }
 0x940   : > { %1435 = vrot.lane.b32.xlu1 %v2741_v61, %s2599_s21 }
 0x941   : > { %1439 = vrot.lane.b32.xlu0 %v2747_v3, %s2598_s20 }
 0x945   : > { %1429 = vrot.lane.b32.xlu0 %v2737_v55, %s2599_s21 }
 0x949   : > { %1433 = vrot.lane.b32.xlu0 %v2744_v1, %s2599_s21 }
 0x96f   : > { %v1304_v33 = vpop.xlane.xlu1 %1303 }
 0x973   : > { %v1298_v30 = vpop.xlane.xlu1 %1297 }
 0x977   : > { %v1307_v32 = vpop.xlane.xlu0 %1306  ;;  %v1444_v38 = vpop.permute.xlu1 %1443 }
 0x978   : > { %2529 = vrcp.f32 %v1307_v32  ;;  %v1467_v7 = vsel %vm585_vm2, %v1444_v38, 0 }
 0x979   : > { %2531 = vrcp.f32 %v1298_v30 }
 0x97a   : > { %2533 = vrcp.f32 %v1304_v33 }
 0x97b   : > { %v1301_v36 = vpop.xlane.xlu0 %1300  ;;  %v1442_v8 = vpop.permute.xlu1 %1441 }
 0x97c   : > { %2535 = vrcp.f32 %v1301_v36  ;;  %v1464_v22 = vsel %vm585_vm2, %v1442_v8, 0 }
 0x97f   : > { %v1341_v37 = vpop.permute.xlu0 %1340 }
 0x980   : > { %2290 = vmatprep.subr.bf16.mxu0 %v1341_v37 }
 0x981   : > { %2291 = vmatpush3.bf16.msra.mxu0 %v1341_v37 }
 0x982   : > { %2356 = vmatprep.subr.msk.bf16.mxu0 %vm585_vm2, %v1444_v38 }
 0x985   : > { %v2530_v49 = vpop.eup %2529 }
 0x986   : > { %v2532_v51 = vpop.eup %2531  ;;  %v1331_v59 = vmul.f32 %v2530_v49, %v2518_v56 }
 0x987   : > { %v2534_v54 = vpop.eup %2533  ;;  %v1328_v58 = vmul.f32 %v2532_v51, %v2979_v53 }
 0x988   : > { %v1330_v4 = vmul.f32 %v2534_v54, %v2975_v50 }
 0x989   : > { %v2536_v52 = vpop.eup %2535 }
 0x98a   : > { %v1329_v2 = vmul.f32 %v2536_v52, %v2520_v62  ;;  %v1337_v6 = vpack.c.bf16 %v1331_v59, %v1330_v4 }
 0x98c   : > { %v1336_v5 = vpack.c.bf16 %v1329_v2, %v1328_v58 }
 0x98e   : > { %2292 = vmatprep.mubr.msk.bf16.mxu0 %vm675_vm3, %v1336_v5 }
 0x98f   : > { %2293 = vmatmul.mubr.msk.bf16.vlgmr.msra.gmra.mxu0 %vm675_vm3, %v1337_v6 }
 0x990   : > { %2301 = vmatpush3.bf16.xpose.msra.mxu0 %v1467_v7 }
 0x991   : > { %2357 = vmatprep.subr.msk.bf16.mxu0 %vm585_vm2, %v1442_v8 }
 0x998   : > { %2303 = vmatpush3.bf16.xpose.msra.mxu0 %v1464_v22 }
 0x9ac   : > { %v1310_v56 = vpop.xlane.xlu1 %1309 }
 0x9b0   : > { %v1316_v53 = vpop.xlane.xlu0 %1315  ;;  %v1319_v62 = vpop.xlane.xlu1 %1318 }
 0x9b1   : > { %2537 = vrcp.f32 %v1316_v53 }
 0x9b2   : > { %2539 = vrcp.f32 %v1319_v62 }
 0x9b3   : > { %2541 = vrcp.f32 %v1310_v56 }
 0x9b4   : > { %v1313_v50 = vpop.xlane.xlu0 %1312  ;;  %v1438_v57 = vpop.permute.xlu1 %1437 }
 0x9b5   : > { %2543 = vrcp.f32 %v1313_v50  ;;  %v1458_v30 = vsel %vm585_vm2, %v1438_v57, 0 }
 0x9b8   : > { %v1440_v23 = vpop.permute.xlu0 %1439  ;;  %v1432_v59 = vpop.permute.xlu1 %1431 }
 0x9b9   : > { %v1461_v26 = vsel %vm585_vm2, %v1440_v23, 0  ;;  %2358 = vmatprep.subr.msk.bf16.mxu0 %vm585_vm2, %v1440_v23 }
 0x9ba   : > { %2305 = vmatpush3.bf16.xpose.msra.mxu0 %v1461_v26 }
 0x9bb   : > { %2359 = vmatprep.subr.msk.bf16.mxu0 %vm585_vm2, %v1438_v57 }
 0x9bc   : > { %v1430_v52 = vpop.permute.xlu0 %1429 }
 0x9be   : > { %v2538_v60 = vpop.eup %2537 }
 0x9bf   : > { %v2540_v0 = vpop.eup %2539  ;;  %v1334_v36 = vmul.f32 %v2538_v60, %v2993_v25  ;;  %v1436_v25 = vpop.permute.xlu1 %1435 }
 0x9c0   : > { %v2542_v33 = vpop.eup %2541  ;;  %v1335_v37 = vmul.f32 %v2540_v0, %v2997_v27  ;;  %v1434_v58 = vpop.permute.xlu0 %1433 }
 0x9c1   : > { %v1332_v38 = vmul.f32 %v2542_v33, %v2991_v24 }
 0x9c2   : > { %v2544_v32 = vpop.eup %2543  ;;  %2307 = vmatpush3.bf16.xpose.msra.mxu0 %v1458_v30  ;;  %v1339_v54 = vpack.c.bf16 %v1335_v37, %v1334_v36 }
 0x9c3   : > { %v1333_v49 = vmul.f32 %v2544_v32, %v3003_v63 }
 0x9c5   : > { %v1338_v51 = vpack.c.bf16 %v1333_v49, %v1332_v38 }
 0x9c7   : > { %2296 = vmatprep.mubr.msk.bf16.mxu0 %vm675_vm3, %v1338_v51 }
 0x9c8   : > { %2297 = vmatmul.mubr.msk.bf16.gmra.mxu0 %vm675_vm3, %v1339_v54 }
 0x9c9   : > { %2308 = vmatprep.mubr.msk.bf16.mxu0 %vm585_vm2, %v1430_v52 }
 0x9d0   : > { %2309 = vmatmul.mubr.msk.bf16.vlgmr.msra.gmra.mxu0 %vm585_vm2, %v1432_v59 }
 0x9d1   : > { %2312 = vmatprep.mubr.msk.bf16.mxu0 %vm585_vm2, %v1434_v58 }
 0x9d8   : > { %2313 = vmatmul.mubr.msk.bf16.gmra.mxu0 %vm585_vm2, %v1436_v25 }
 0xa4f   : > { %v3037_v24 = vpop.f32.mrf.mxu0 }
 0xa51   : > { %v3039_v27 = vpop.f32.mrf.mxu0 }
 0xa53   : > { %v3041_v63 = vpop.f32.mrf.mxu0 }
 0xa55   : > { %v3045_v4 = vpop.f32.mrf.mxu0 }
 0xa56   : > { %v2395_v5 = vpack.i.bf16 %v3045_v4, %v3039_v27 }
 0xa88   : > { %v3049_v6 = vpop.f32.mrf.mxu0 }
 0xa8a   : > { %v3051_v7 = vpop.f32.mrf.mxu0 }
 0xa8c   : > { %v3053_v8 = vpop.f32.mrf.mxu0 }
 0xa8e   : > { %v3057_v56 = vpop.f32.mrf.mxu0 }
 0xa8f   : > { %v3220_v31 = vpack.i.bf16 %v3057_v56, %v3051_v7 }
 0xa90   : > { %v2310_v62 = vpop.f32.mrf.mxu0 }
 0xa91   : > { %v1540_v60 = vsel %vm675_vm3, %v2310_v62, -inf }
 0xa92   : > { %v1503_v50 = vpop.f32.mrf.mxu0 }
 0xa93   : > { %v1534_v23 = vsel %vm675_vm3, %v1503_v50, -inf }
 0xa94   : > { %1535 = vmax.xlane.f32.xlu0 %v1534_v23  ;;  %v2311_v26 = vpop.f32.mrf.mxu0 }
 0xa95   : > { %v1543_v32 = vsel %vm675_vm3, %v2311_v26, -inf }
 0xa96   : > { %v1506_v57 = vpop.f32.mrf.mxu0 }
 0xa97   : > { %v1537_v0 = vsel %vm675_vm3, %v1506_v57, -inf }
 0xa98   : > { %1541 = vmax.xlane.f32.xlu0 %v1540_v60  ;;  %1538 = vmax.xlane.f32.xlu1 %v1537_v0  ;;  %v2314_v33 = vpop.f32.mrf.mxu0 }
 0xa99   : > { %v1552_v51 = vsel %vm675_vm3, %v2314_v33, -inf }
 0xa9a   : > { %v1519_v30 = vpop.f32.mrf.mxu0 }
 0xa9b   : > { %v1546_v36 = vsel %vm675_vm3, %v1519_v30, -inf }
 0xa9c   : > { %1544 = vmax.xlane.f32.xlu0 %v1543_v32  ;;  %1547 = vmax.xlane.f32.xlu1 %v1546_v36  ;;  %v2315_v37 = vpop.f32.mrf.mxu0 }
 0xa9d   : > { %v1555_v54 = vsel %vm675_vm3, %v2315_v37, -inf }
 0xa9e   : > { %v1522_v38 = vpop.f32.mrf.mxu0 }
 0xa9f   : > { %v1549_v49 = vsel %vm675_vm3, %v1522_v38, -inf }
 0xaa0   : > { %1553 = vmax.xlane.f32.xlu1 %v1552_v51  ;;  %1550 = vmax.xlane.f32.xlu0 %v1549_v49 }
 0xaa4   : > { %1556 = vmax.xlane.f32.xlu0 %v1555_v54 }
 0xab1   : > { %1632 = vrot.lane.b32.xlu1 %v2741_v61, %s2600_s22 }
 0xb1d   : > { %v1536_v52 = vpop.xlane.xlu0 %1535 }
 0xb1e   : > { %v1558_v59 = vsub.f32 %v1503_v50, %v1536_v52 }
 0xb20   : > { %v1566_v60 = vmul.f32 1.442695, %v1558_v59 }
 0xb21   : > { %v1542_v58 = vpop.xlane.xlu0 %1541  ;;  %v1539_v25 = vpop.xlane.xlu1 %1538 }
 0xb22   : > { %v1560_v23 = vsub.f32 %v2310_v62, %v1542_v58  ;;  %v1559_v32 = vsub.f32 %v1506_v57, %v1539_v25 }
 0xb24   : > { %v1570_v0 = vmul.f32 1.442695, %v1560_v23  ;;  %v1568_v49 = vmul.f32 1.442695, %v1559_v32 }
 0xb25   : > { %v1545_v36 = vpop.xlane.xlu0 %1544  ;;  %v1548_v22 = vpop.xlane.xlu1 %1547 }
 0xb26   : > { %2545 = vpow2.f32 %v1570_v0  ;;  %v1561_v51 = vsub.f32 %v2311_v26, %v1545_v36  ;;  %v1562_v54 = vsub.f32 %v1519_v30, %v1548_v22 }
 0xb27   : > { %2547 = vpow2.f32 %v1566_v60 }
 0xb28   : > { %v1572_v45 = vmul.f32 1.442695, %v1561_v51  ;;  %v1574_v2 = vmul.f32 1.442695, %v1562_v54 }
 0xb29   : > { %v1551_v53 = vpop.xlane.xlu0 %1550  ;;  %v1554_v47 = vpop.xlane.xlu1 %1553 }
 0xb2a   : > { %2549 = vpow2.f32 %v1572_v45  ;;  %v1564_v61 = vsub.f32 %v2314_v33, %v1554_v47  ;;  %v1563_v50 = vsub.f32 %v1522_v38, %v1551_v53 }
 0xb2b   : > { %2551 = vpow2.f32 %v1568_v49 }
 0xb2c   : > { %v1578_v52 = vmul.f32 1.442695, %v1564_v61  ;;  %v1576_v57 = vmul.f32 1.442695, %v1563_v50 }
 0xb2d   : > { %v1557_v62 = vpop.xlane.xlu0 %1556  ;;  %v1633_v59 = vpop.permute.xlu1 %1632 }
 0xb2e   : > { %v1565_v58 = vsub.f32 %v2315_v37, %v1557_v62  ;;  %2316 = vmatprep.subr.bf16.mxu1 %v1633_v59  ;;  %2553 = vpow2.f32 %v1578_v52 }
 0xb2f   : > { %2317 = vmatpush3.bf16.msra.mxu1 %v1633_v59  ;;  %2555 = vpow2.f32 %v1574_v2 }
 0xb30   : > { %v1580_v26 = vmul.f32 1.442695, %v1565_v58 }
 0xb32   : > { %2557 = vpow2.f32 %v1580_v26 }
 0xb33   : > { %v3071_v25 = vpop.eup %2545  ;;  %2559 = vpow2.f32 %v1576_v57 }
 0xb34   : > { %v1588_v45 = vsel %vm675_vm3, %v3071_v25, 0.0  ;;  %v2548_v47 = vpop.eup %2547 }
 0xb35   : > { %1589 = vadd.xlane.f32.xlu1 %v1588_v45  ;;  %v1582_v53 = vsel %vm675_vm3, %v2548_v47, 0.0 }
 0xb37   : > { %v3075_v22 = vpop.eup %2549 }
 0xb38   : > { %v1591_v33 = vsel %vm675_vm3, %v3075_v22, 0.0  ;;  %v2552_v30 = vpop.eup %2551 }
 0xb39   : > { %1583 = vadd.xlane.f32.xlu1 %v1582_v53  ;;  %1592 = vadd.xlane.f32.xlu0 %v1591_v33  ;;  %v1585_v37 = vsel %vm675_vm3, %v2552_v30, 0.0 }
 0xb3b   : > { %v3080_v2 = vpop.eup %2553 }
 0xb3c   : > { %v1600_v38 = vsel %vm675_vm3, %v3080_v2, 0.0  ;;  %v3085_v23 = vpop.eup %2555 }
 0xb3d   : > { %1586 = vadd.xlane.f32.xlu0 %v1585_v37  ;;  %1601 = vadd.xlane.f32.xlu1 %v1600_v38  ;;  %v1594_v36 = vsel %vm675_vm3, %v3085_v23, 0.0 }
 0xb3f   : > { %v3087_v60 = vpop.eup %2557 }
 0xb40   : > { %v1603_v0 = vsel %vm675_vm3, %v3087_v60, 0.0  ;;  %v3091_v32 = vpop.eup %2559 }
 0xb41   : > { %1604 = vadd.xlane.f32.xlu0 %v1603_v0  ;;  %1595 = vadd.xlane.f32.xlu1 %v1594_v36  ;;  %v1597_v51 = vsel %vm675_vm3, %v3091_v32, 0.0 }
 0xb45   : > { %1598 = vadd.xlane.f32.xlu0 %v1597_v51 }
 0xb52   : > { %1628 = vrot.lane.b32.xlu1 %v2747_v3, %s2600_s22  ;;  %v2577_v3 = vld [vmem:[%s3214_s1 + $0x8] sm:$0xff]  }
 0xb56   : > { %1626 = vrot.lane.b32.xlu1 %v2737_v55, %s2600_s22  ;;  %v3218_v55 = vpack.i.bf16 %v3041_v63, %v3037_v24 }
 0xb5a   : > { %2386 = vrot.lane.b32.xlu1 %v2385_v41, %s2601_s23 }
 0xb5b   : > { %1630 = vrot.lane.b32.xlu0 %v2744_v1, %s2600_s22  ;;  %v2578_v1 = vld [vmem:[%s3214_s1] sm:$0xff]  }
 0xb5e   : > { %2396 = vrot.lane.b32.xlu1 %v2395_v5, %s2602_s24 }
 0xb5f   : > { %1843 = vrot.lane.b32.xlu0 %v2577_v3, %s2603_s27 }
 0xb63   : > { %2391 = vrot.lane.b32.xlu0 %v2390_v34, %s2601_s23 }
 0xb67   : > { %2401 = vrot.lane.b32.xlu0 %v3218_v55, %s2602_s24 }
 0xb6b   : > { %1841 = vrot.lane.b32.xlu0 %v2578_v1, %s2603_s27 }
 0xb6f   : > { %2406 = vrot.lane.b32.xlu0 %v3219_v28, %s2601_s23 }
 0xb73   : > { %2426 = vrot.lane.b32.xlu0 %v3220_v31, %s2602_s24 }
 0xbbe   : > { %v1590_v35 = vpop.xlane.xlu1 %1589 }
 0xbc2   : > { %v1593_v34 = vpop.xlane.xlu0 %1592  ;;  %v1584_v40 = vpop.xlane.xlu1 %1583 }
 0xbc3   : > { %2561 = vrcp.f32 %v1584_v40 }
 0xbc6   : > { %v1587_v41 = vpop.xlane.xlu0 %1586  ;;  %v1602_v24 = vpop.xlane.xlu1 %1601 }
 0xbc7   : > { %2563 = vrcp.f32 %v1587_v41 }
 0xbc8   : > { %2565 = vrcp.f32 %v1593_v34 }
 0xbc9   : > { %2567 = vrcp.f32 %v1590_v35 }
 0xbca   : > { %v1605_v27 = vpop.xlane.xlu0 %1604  ;;  %v1596_v63 = vpop.xlane.xlu1 %1595 }
 0xbcb   : > { %2569 = vrcp.f32 %v1596_v63 }
 0xbce   : > { %v1599_v4 = vpop.xlane.xlu0 %1598  ;;  %v1629_v46 = vpop.permute.xlu1 %1628 }
 0xbcf   : > { %2571 = vrcp.f32 %v1599_v4 }
 0xbd0   : > { %2573 = vrcp.f32 %v1605_v27  ;;  %v2562_v43 = vpop.eup %2561 }
 0xbd1   : > { %2575 = vrcp.f32 %v1602_v24  ;;  %v1614_v56 = vmul.f32 %v2562_v43, %v2548_v47 }
 0xbd2   : > { %v1631_v5 = vpop.permute.xlu0 %1630  ;;  %v1627_v62 = vpop.permute.xlu1 %1626 }
 0xbd3   : > { %2318 = vmatprep.subr.bf16.mxu1 %v1631_v5 }
 0xbd4   : > { %v2564_v7 = vpop.eup %2563  ;;  %2319 = vmatpush3.bf16.msra.mxu1 %v1631_v5 }
 0xbd5   : > { %2320 = vmatprep.subr.bf16.mxu1 %v1629_v46  ;;  %v1615_v49 = vmul.f32 %v2564_v7, %v2552_v30  ;;  %v2566_v54 = vpop.eup %2565  ;;  %v2579_v7 = vld [vmem:[%s3215_s2] ss:$0 sm:$0xff] }
 0xbd6   : > { %v1844_v61 = vpop.permute.xlu0 %1843  ;;  %v2568_v52 = vpop.eup %2567  ;;  %v1617_v59 = vmul.f32 %v2566_v54, %v3075_v22 }
 0xbd7   : > { %v1622_v50 = vpack.c.bf16 %v1615_v49, %v1614_v56  ;;  %v1616_v26 = vmul.f32 %v2568_v52, %v3071_v25  ;;  %v2387_v56 = vpop.permute.xlu1 %2386 }
 0xbd8   : > { %2321 = vmatpush3.bf16.msra.mxu1 %v1629_v46  ;;  %v2570_v58 = vpop.eup %2569  ;;  %v3222_v46 = vpack.i.bf16 %v3053_v8, %v3049_v6 }
 0xbd9   : > { %2322 = vmatprep.subr.bf16.mxu1 %v1627_v62  ;;  %2324 = vmatprep.mubr.msk.bf16.mxu1 %vm675_vm3, %v1622_v50  ;;  %v1623_v47 = vpack.c.bf16 %v1617_v59, %v1616_v26  ;;  %v1618_v30 = vmul.f32 %v2570_v58, %v3085_v23 }
 0xbda   : > { %v2392_v57 = vpop.permute.xlu0 %2391 }
 0xbdb   : > { %v2394_v53 = vunpack.i.h.bf16 %v2392_v57  ;;  %v2393_v33 = vunpack.i.l.bf16 %v2392_v57  ;;  %v2397_v49 = vpop.permute.xlu1 %2396 }
 0xbdc   : > { %v2572_v45 = vpop.eup %2571  ;;  %2323 = vmatpush3.bf16.msra.mxu1 %v1627_v62  ;;  %v2399_v62 = vunpack.i.h.bf16 %v2397_v49  ;;  %v2398_v6 = vunpack.i.l.bf16 %v2397_v49 }
 0xbdd   : > { %v1619_v37 = vmul.f32 %v2572_v45, %v3091_v32  ;;  %2332 = vmatprep.subr.bf16.mxu1 %v1844_v61  ;;  %v2574_v38 = vpop.eup %2573  ;;  %v1814_v25 = vsel %vm585_vm2, %v2851_v15, %v2394_v53  ;;  %v1813_v55 = vsel %vm585_vm2, %v2847_v13, %v2393_v33 }
 0xbde   : > { %v2402_v0 = vpop.permute.xlu0 %2401  ;;  %v2576_v3 = vpop.eup %2575  ;;  %v1621_v1 = vmul.f32 %v2574_v38, %v3087_v60 }
 0xbdf   : > { %v2404_v22 = vunpack.i.h.bf16 %v2402_v0  ;;  %v2403_v36 = vunpack.i.l.bf16 %v2402_v0  ;;  %2325 = vmatmul.mubr.msk.bf16.vlgmr.msra.gmra.mxu1 %vm675_vm3, %v1623_v47  ;;  %v1624_v51 = vpack.c.bf16 %v1619_v37, %v1618_v30  ;;  %v1620_v31 = vmul.f32 %v2576_v3, %v3080_v2 }
 0xbe0   : > { %2333 = vmatpush3.bf16.msra.mxu1 %v1844_v61  ;;  %v3221_v2 = vpack.i.bf16 %v2955_v44, %v2951_v42  ;;  %v2389_v44 = vunpack.i.h.bf16 %v2387_v56  ;;  %v2388_v61 = vunpack.i.l.bf16 %v2387_v56 }
 0xbe1   : > { %v1822_v23 = vsel %vm1819_vm4, %v1813_v55, %v2403_v36  ;;  %v1823_v32 = vsel %vm1819_vm4, %v1814_v25, %v2404_v22  ;;  %2328 = vmatprep.mubr.msk.bf16.mxu1 %vm675_vm3, %v1624_v51  ;;  %v1625_v35 = vpack.c.bf16 %v1621_v1, %v1620_v31 }
 0xbe2   : > { %v1842_v28 = vpop.permute.xlu0 %1841  ;;  %v1812_v26 = vsel %vm585_vm2, %v2853_v16, %v2389_v44  ;;  %v1811_v45 = vsel %vm585_vm2, %v2849_v14, %v2388_v61 }
 0xbe3   : > { %2334 = vmatprep.subr.bf16.mxu1 %v1842_v28  ;;  %v1820_v30 = vsel %vm1819_vm4, %v1811_v45, %v2398_v6  ;;  %v1821_v37 = vsel %vm1819_vm4, %v1812_v26, %v2399_v62 }
 0xbe4   : > { %2335 = vmatpush3.bf16.msra.mxu1 %v1842_v28 }
 0xbe6   : > { %v2407_v54 = vpop.permute.xlu0 %2406 }
 0xbe7   : > { %2329 = vmatmul.mubr.msk.bf16.gmra.mxu1 %vm675_vm3, %v1625_v35  ;;  %v2409_v38 = vunpack.i.h.bf16 %v2407_v54  ;;  %v2408_v0 = vunpack.i.l.bf16 %v2407_v54 }
 0xbe9   : > { %v1816_v14 = vsel %vm585_vm2, %v2861_v21, %v2409_v38 }
 0xbea   : > { %v2427_v53 = vpop.permute.xlu0 %2426 }
 0xbeb   : > { %v2429_v51 = vunpack.i.h.bf16 %v2427_v53  ;;  %v2428_v3 = vunpack.i.l.bf16 %v2427_v53 }
 0xbed   : > { %v1825_v31 = vsel %vm1819_vm4, %v1816_v14, %v2429_v51 }
 0xc9f   : > { %v2326_v15 = vpop.f32.mrf.mxu1 }
 0xca1   : > { %v1684_v13 = vpop.f32.mrf.mxu1 }
 0xca3   : > { %v2327_v34 = vpop.f32.mrf.mxu1 }
 0xca4   : > { %v2410_v40 = vpack.i.bf16 %v2327_v34, %v2326_v15 }
 0xca5   : > { %v1687_v41 = vpop.f32.mrf.mxu1 }
 0xca6   : > { %2411 = vrot.lane.b32.xlu1 %v2410_v40, %s2604_s30  ;;  %v2415_v27 = vpack.i.bf16 %v1687_v41, %v1684_v13 }
 0xca7   : > { %v2330_v24 = vpop.f32.mrf.mxu1 }
 0xca9   : > { %v1700_v63 = vpop.f32.mrf.mxu1 }
 0xcaa   : > { %2416 = vrot.lane.b32.xlu1 %v2415_v27, %s2604_s30 }
 0xcab   : > { %v2331_v60 = vpop.f32.mrf.mxu1 }
 0xcac   : > { %v2440_v5 = vpack.i.bf16 %v2331_v60, %v2330_v24 }
 0xcad   : > { %v1703_v4 = vpop.f32.mrf.mxu1 }
 0xcae   : > { %v2435_v43 = vpack.i.bf16 %v1703_v4, %v1700_v63  ;;  %2421 = vrot.lane.b32.xlu1 %v3221_v2, %s2601_s23 }
 0xcb0   : > { %2436 = vrot.lane.b32.xlu0 %v2435_v43, %s2604_s30 }
 0xcb2   : > { %2431 = vrot.lane.b32.xlu1 %v3222_v46, %s2602_s24 }
 0xcb4   : > { %1847 = vrot.lane.b32.xlu0 %v2579_v7, %s2603_s27 }
 0xcb6   : > { %2441 = vrot.lane.b32.xlu1 %v2440_v5, %s2604_s30 }
 0xd18   : > { %v2412_v42 = vpop.permute.xlu1 %2411 }
 0xd19   : > { %v2414_v50 = vunpack.i.h.bf16 %v2412_v42  ;;  %v2413_v52 = vunpack.i.l.bf16 %v2412_v42 }
 0xd1b   : > { %v1832_v8 = vsel %vm1828_vm5, %v1823_v32, %v2414_v50  ;;  %v1831_v59 = vsel %vm1828_vm5, %v1822_v23, %v2413_v52  ;;  %v1815_v23 = vsel %vm585_vm2, %v2857_v19, %v2408_v0 }
 0xd1c   : > { %v1838_v58 = vpack.c.bf16 %v1832_v8, %v1831_v59  ;;  %v2417_v57 = vpop.permute.xlu1 %2416  ;;  %v1824_v28 = vsel %vm1819_vm4, %v1815_v23, %v2428_v3 }
 0xd1d   : > { %v2419_v33 = vunpack.i.h.bf16 %v2417_v57  ;;  %v2418_v47 = vunpack.i.l.bf16 %v2417_v57 }
 0xd1f   : > { %v1829_v22 = vsel %vm1828_vm5, %v1820_v30, %v2418_v47  ;;  %v1830_v36 = vsel %vm1828_vm5, %v1821_v37, %v2419_v33 }
 0xd20   : > { %v1837_v25 = vpack.c.bf16 %v1830_v36, %v1829_v22  ;;  %v2422_v16 = vpop.permute.xlu1 %2421 }
 0xd21   : > { %v2424_v15 = vunpack.i.h.bf16 %v2422_v16  ;;  %v2423_v13 = vunpack.i.l.bf16 %v2422_v16 }
 0xd22   : > { %v2437_v55 = vpop.permute.xlu0 %2436  ;;  %2336 = vmatprep.mubr.msk.bf16.mxu1 %vm235_vm1, %v1837_v25 }
 0xd23   : > { %v2439_v32 = vunpack.i.h.bf16 %v2437_v55  ;;  %v2438_v1 = vunpack.i.l.bf16 %v2437_v55  ;;  %2337 = vmatmul.mubr.msk.bf16.vlgmr.msra.gmra.mxu1 %vm235_vm1, %v1838_v58  ;;  %v1818_v19 = vsel %vm585_vm2, %v2859_v20, %v2424_v15  ;;  %v1817_v63 = vsel %vm585_vm2, %v2855_v18, %v2423_v13 }
 0xd24   : > { %v2432_v35 = vpop.permute.xlu1 %2431 }
 0xd25   : > { %v1834_v34 = vsel %vm1828_vm5, %v1825_v31, %v2439_v32  ;;  %v1833_v40 = vsel %vm1828_vm5, %v1824_v28, %v2438_v1  ;;  %v2434_v21 = vunpack.i.h.bf16 %v2432_v35  ;;  %v2433_v24 = vunpack.i.l.bf16 %v2432_v35 }
 0xd26   : > { %v1839_v41 = vpack.c.bf16 %v1834_v34, %v1833_v40  ;;  %v1848_v49 = vpop.permute.xlu0 %1847 }
 0xd27   : > { %v1826_v43 = vsel %vm1819_vm4, %v1817_v63, %v2433_v24  ;;  %v1827_v2 = vsel %vm1819_vm4, %v1818_v19, %v2434_v21 }
 0xd28   : > { %v2442_v27 = vpop.permute.xlu1 %2441  ;;  %2340 = vmatprep.mubr.msk.bf16.mxu1 %vm235_vm1, %v1839_v41 }
 0xd29   : > { %v2444_v60 = vunpack.i.h.bf16 %v2442_v27  ;;  %v2443_v4 = vunpack.i.l.bf16 %v2442_v27 }
 0xd2b   : > { %v1835_v46 = vsel %vm1828_vm5, %v1826_v43, %v2443_v4  ;;  %v1836_v5 = vsel %vm1828_vm5, %v1827_v2, %v2444_v60 }
 0xd2c   : > { %v1840_v7 = vpack.c.bf16 %v1836_v5, %v1835_v46 }
 0xd2e   : > { %2341 = vmatmul.mubr.msk.bf16.gmra.mxu1 %vm235_vm1, %v1840_v7 }
 0xde3   : > { %v2338_v56 = vpop.f32.mrf.mxu1 }
 0xde4   : > { %v1905_v50 = vadd.f32 %v2338_v56, %v1848_v49 }
 0xde5   : > { %v1896_v54 = vpop.f32.mrf.mxu1 }
 0xde6   : > { %v1897_v20 = vadd.f32 %v1896_v54, %v1848_v49  ;;  %v1929_v6 = vadd.f32 %v1905_v50, %v2662_v11 }
 0xde7   : > { %v2339_v42 = vpop.f32.mrf.mxu1 }
 0xde8   : > { %v1927_v18 = vadd.f32 %v1897_v20, %v2658_v9  ;;  %v1908_v8 = vadd.f32 %v2339_v42, %v1848_v49 }
 0xde9   : > { %v1899_v44 = vpop.f32.mrf.mxu1 }
 0xdea   : > { %v1900_v61 = vadd.f32 %v1899_v44, %v1848_v49  ;;  %1935 = vxpose.xlu1.b32.start [1/8] (short) (narrow) %v1927_v18, 32  ;;  %v1930_v57 = vadd.f32 %v1908_v8, %v2664_v12 }
 0xdec   : > { %v1928_v52 = vadd.f32 %v1900_v61, %v2660_v10 }
 0xdee   : > { %v2342_v62 = vpop.f32.mrf.mxu1  ;;  %1936 = vxpose.xlu1.b32.cont [2/8] (short) (narrow) %v1928_v52, 32 }
 0xdef   : > { %v1921_v33 = vadd.f32 %v2342_v62, %v1848_v49 }
 0xdf0   : > { %v1912_v59 = vpop.f32.mrf.mxu1 }
 0xdf1   : > { %v1913_v26 = vadd.f32 %v1912_v59, %v1848_v49  ;;  %v1933_v11 = vadd.f32 %v1921_v33, %v2699_v39 }
 0xdf2   : > { %v2343_v58 = vpop.f32.mrf.mxu1  ;;  %1937 = vxpose.xlu1.b32.cont [3/8] (short) (narrow) %v1929_v6, 32 }
 0xdf3   : > { %v1931_v9 = vadd.f32 %v1913_v26, %v2674_v17  ;;  %v1924_v47 = vadd.f32 %v2343_v58, %v1848_v49 }
 0xdf4   : > { %v1915_v45 = vpop.f32.mrf.mxu1 }
 0xdf5   : > { %v1916_v53 = vadd.f32 %v1915_v45, %v1848_v49  ;;  %v1934_v30 = vadd.f32 %v1924_v47, %v2707_v48 }
 0xdf6   : > { %1938 = vxpose.xlu1.b32.cont [4/8] (short) (narrow) %v1930_v57, 32 }
 0xdf7   : > { %v1932_v10 = vadd.f32 %v1916_v53, %v2689_v29 }
 0xdfa   : > { %1939 = vxpose.xlu1.b32.cont [5/8] (short) (narrow) %v1931_v9, 32 }
 0xdfe   : > { %1940 = vxpose.xlu1.b32.cont [6/8] (short) (narrow) %v1932_v10, 32 }
 0xe02   : > { %1941 = vxpose.xlu1.b32.cont [7/8] (short) (narrow) %v1933_v11, 32 }
 0xe06   : > { %1942 = vxpose.xlu1.b32.end [8/8] (short) (narrow) %v1934_v30, 32 }
 0xe66   : > { %v1951_v12 = vpop.trf.xlu1 }
 0xe67   : > { %1967 = vst.msk [vmem:[%s197_s9] sm:$0xff] %vm675_vm3, %v1951_v12 }
 0xe6a   : > { %v1952_v17 = vpop.trf.xlu1 }
 0xe6b   : > { %1968 = vst.msk [vmem:[%s197_s9 + $0x8] sm:$0xff] %vm675_vm3, %v1952_v17 }
 0xe6e   : > { %v1953_v29 = vpop.trf.xlu1 }
 0xe6f   : > { %1969 = vst.msk [vmem:[%s197_s9 + $0x10] sm:$0xff] %vm675_vm3, %v1953_v29 }
 0xe72   : > { %v1954_v39 = vpop.trf.xlu1 }
 0xe73   : > { %1970 = vst.msk [vmem:[%s197_s9 + $0x18] sm:$0xff] %vm675_vm3, %v1954_v39 }
 0xe74 PF: > { %s14_s15 = sadd.s32 1, %s2586_s15  }
 0xe75   : > { %p11_p4 = scmp.ge.s32.totalorder %s14_s15, 6  }
 0xe77   :  { %13 = sbr.rel (!%p11_p4) target bundleno = 1 (0x1), region = 66 }

</bundles_post_ra>
